<compile_context>
chip_gen: v5e
topology: v5e:2x2
jax: 0.10.0
libtpu: 0.0.40
codegen_flags: <defaults>
</compile_context>

<pallas_src>
from functools import partial

import jax
import jax.numpy as jnp
from jax.experimental import pallas as pl
from jax.experimental.pallas import tpu as pltpu


def gatv2_kernel(xf_ref, xt_ref, xrow_ref, wl_ref, wlt_ref, wr_ref,
                 bl_ref, blt_ref, br_ref, att_ref, gbias_ref, mask_ref,
                 gamma_ref, beta_ref, out_ref, hacc_ref, *, heads, out_ch):
    f32 = jnp.float32

    # ---- tiny projections (MXU) -------------------------------------------
    # source features, node-major (for the neighbor aggregation)
    xl = jnp.dot(xf_ref[...], wl_ref[...], preferred_element_type=f32) + bl_ref[...]      # (M, H*F)
    # source features, feature-major (lane-dense rows for the logit outer-sum)
    xlt = jnp.dot(wlt_ref[...], xt_ref[...], preferred_element_type=f32) + blt_ref[...]   # (H*F, M)
    # target features for this row tile
    xr = jnp.dot(xrow_ref[...], wr_ref[...], preferred_element_type=f32) + br_ref[...]    # (TM, H*F)

    # additive bias mask: 0 for edges (incl. self-loops), -1e9 otherwise
    mask = mask_ref[...].astype(f32)                                                      # (TM, M)

    for h in range(heads):
        # GATv2: e_ij = a_h . LeakyReLU(x_r[i] + x_l[j], 0.2), accumulated
        # per-feature so every intermediate is a lane-dense (TM, M) f32 tile.
        logits = mask
        for f in range(out_ch):
            c = h * out_ch + f
            col = xr[:, c:c + 1]                # (TM, 1)  target feature f
            row = xlt[c:c + 1, :]               # (1, M)   source feature f
            z = col + row                       # (TM, M)
            z = jnp.where(z > 0, z, 0.2 * z)    # LeakyReLU(0.2)
            logits = logits + att_ref[h, f] * z  # scalar from SMEM

        # masked softmax (masked entries are ~-1e9 -> exp underflows to 0)
        m = jnp.max(logits, axis=1, keepdims=True)                                        # (TM, 1)
        e = jnp.exp(logits - m)                                                           # (TM, M)
        denom = jnp.sum(e, axis=1, keepdims=True)                                         # (TM, 1)

        # aggregate with UN-normalized weights, normalize the small result
        head = jnp.dot(e, xl[:, h * out_ch:(h + 1) * out_ch],
                       preferred_element_type=f32)                                        # (TM, F)
        head = head * pl.reciprocal(denom, approx=True)
        hacc_ref[:, h * out_ch:(h + 1) * out_ch] = head

    # bias -> LayerNorm(eps=1e-5, biased var) -> LeakyReLU(0.01)
    out = hacc_ref[...] + gbias_ref[...]                                                  # (TM, H*F)
    mu = jnp.mean(out, axis=-1, keepdims=True)
    var = jnp.mean((out - mu) ** 2, axis=-1, keepdims=True)
    out = (out - mu) * jax.lax.rsqrt(var + 1e-5)
    out = out * gamma_ref[...] + beta_ref[...]
    out_ref[...] = jnp.where(out > 0, out, 0.01 * out)


def _pick_tile(M, tm):
    tm = min(tm, M)
    for t in range(tm, 0, -1):
        if M % t == 0 and (t % 8 == 0 or t == M):
            return t
    return M


def graph_attention_conv2d(x, edge_index, params, tm=256):
    """x: (B, C, N, 1) float; edge_index: (2, E) int32 (row0=src, row1=dst)."""
    B, C, N, _ = x.shape
    M = B * N
    heads, out_ch = params["heads"], params["out_channels"]
    HF = heads * out_ch
    tm = _pick_tile(M, tm)
    grid = (M // tm,)

    # x.squeeze(3).permute(0,2,1).reshape(-1, C)
    nodes = jnp.transpose(x[:, :, :, 0], (0, 2, 1)).reshape(M, C).astype(jnp.float32)
    nodes_t = nodes.T                                        # (C, M)

    # Additive attention-bias mask (only O(M^2) input), bf16:
    #   0 where an edge j->i exists (self-loops removed then re-added, as in
    #   GATv2Conv(add_self_loops=True)), -1e9 otherwise.
    src, dst = edge_index[0], edge_index[1]
    valid = (src != dst).astype(jnp.float32)
    adj = jnp.zeros((M, M), jnp.float32).at[dst, src].max(valid)
    diag = jnp.arange(M)
    adj = adj.at[diag, diag].set(1.0)
    bias_mask = jnp.where(adj > 0, 0.0, -1e9).astype(jnp.bfloat16)

    w_l, w_r = params["w_l"], params["w_r"]
    b_l, b_r = params["b_l"], params["b_r"]
    w_lt, b_lt = w_l.T, b_l.T                                # (HF, C), (HF, 1)

    ins = (nodes, nodes_t, nodes, w_l, w_lt, w_r, b_l, b_lt, b_r,
           params["att"], params["gat_bias"], bias_mask,
           params["ln_gamma"], params["ln_beta"])

    def const(shape):
        nd = len(shape)
        return pl.BlockSpec(shape, lambda i, _nd=nd: (0,) * _nd)

    in_specs = [
        const((M, C)),                                       # nodes (full)      -> xl
        const((C, M)),                                       # nodes^T (full)    -> xl^T
        pl.BlockSpec((tm, C), lambda i: (i, 0)),             # node row tile     -> xr
        const((C, HF)), const((HF, C)), const((C, HF)),      # w_l, w_l^T, w_r
        const((1, HF)), const((HF, 1)), const((1, HF)),      # b_l, b_l^T, b_r
        pl.BlockSpec(memory_space=pltpu.MemorySpace.SMEM),   # att (heads, F) scalars
        const((1, HF)),                                      # GAT output bias
        pl.BlockSpec((tm, M), lambda i: (i, 0)),             # additive mask slab (bf16)
        const((1, HF)), const((1, HF)),                      # LN gamma, beta
    ]
    out_specs = pl.BlockSpec((tm, HF), lambda i: (i, 0))

    # scoped VMEM: double-buffered bf16 mask slab + f32 (TM, M) working values
    vmem_limit = int(min(64 * 2**20,
                         max(24 * 2**20,
                             2 * tm * M * 2 + 4 * tm * M * 4 + (4 << 20))))

    kernel = partial(gatv2_kernel, heads=heads, out_ch=out_ch)
    out = pl.pallas_call(
        kernel,
        out_shape=jax.ShapeDtypeStruct((M, HF), jnp.float32),
        grid=grid,
        in_specs=in_specs,
        out_specs=out_specs,
        scratch_shapes=[pltpu.VMEM((tm, HF), jnp.float32)],
        compiler_params=pltpu.CompilerParams(
            dimension_semantics=("parallel",),
            vmem_limit_bytes=vmem_limit),
    )(*ins)
    return out


def init_params(key, in_channels, out_channels, heads=2):
    HF = heads * out_channels
    k1, k2, k3, k4, k5, k6 = jax.random.split(key, 6)
    s_lin = (6.0 / (in_channels + HF)) ** 0.5          # glorot
    s_att = (6.0 / (1 + out_channels)) ** 0.5
    return {
        "heads": heads,
        "out_channels": out_channels,
        # Linear weights stored as (in, out) so the kernel does x @ W.
        "w_l": jax.random.uniform(k1, (in_channels, HF), jnp.float32, -s_lin, s_lin),
        "w_r": jax.random.uniform(k2, (in_channels, HF), jnp.float32, -s_lin, s_lin),
        "b_l": 0.1 * jax.random.normal(k3, (1, HF), jnp.float32),
        "b_r": 0.1 * jax.random.normal(k4, (1, HF), jnp.float32),
        "att": jax.random.uniform(k5, (heads, out_channels), jnp.float32, -s_att, s_att),
        "gat_bias": 0.1 * jax.random.normal(k6, (1, HF), jnp.float32),
        "ln_gamma": jnp.ones((1, HF), jnp.float32),    # nn.LayerNorm defaults
        "ln_beta": jnp.zeros((1, HF), jnp.float32),
    }


if __name__ == "__main__":
    # TODO(synk): Grapher's fc1/fc2 1x1 convs, BatchNorm, kNN graph build and
    # DropPath/Dropout remain outside this kernel (graph-conv core only).
    B, C, N = 2, 4, 64            # in_channels=4, M = 128 nodes
    out_channels = 8              # GATv2Conv out_channels; output dim = 2*8 = 16
    M = B * N

    key = jax.random.PRNGKey(0)
    kx, kp = jax.random.split(key)
    x = jax.random.normal(kx, (B, C, N, 1), jnp.float32)

    # Deterministic edge list: two rings over the flattened nodes plus a couple
    # of explicit self-loops (which GATv2 removes and re-adds).
    idx = jnp.arange(M, dtype=jnp.int32)
    src = jnp.concatenate([idx, idx, jnp.array([0, 3], jnp.int32)])
    dst = jnp.concatenate([(idx + 1) % M, (idx + 5) % M, jnp.array([0, 3], jnp.int32)])
    edge_index = jnp.stack([src, dst]).astype(jnp.int32)   # (2, E)

    params = init_params(kp, C, out_channels, heads=2)

    out = graph_attention_conv2d(x, edge_index, params, tm=32)   # grid = (4,)
    jax.block_until_ready(out)
    assert out.shape == (M, 2 * out_channels)
    assert bool(jnp.all(jnp.isfinite(out)))
    print("KERNEL_OK")
</pallas_src>

<mosaic_0001>
module attributes {stable_mosaic.version = 11 : i64} {
  func.func @gatv2_kernel(%arg0: i32, %arg1: memref<128x4xf32, #tpu.memory_space<vmem>>, %arg2: memref<4x128xf32, #tpu.memory_space<vmem>>, %arg3: memref<32x4xf32, #tpu.memory_space<vmem>>, %arg4: memref<4x16xf32, #tpu.memory_space<vmem>>, %arg5: memref<16x4xf32, #tpu.memory_space<vmem>>, %arg6: memref<4x16xf32, #tpu.memory_space<vmem>>, %arg7: memref<1x16xf32, #tpu.memory_space<vmem>>, %arg8: memref<16x1xf32, #tpu.memory_space<vmem>>, %arg9: memref<1x16xf32, #tpu.memory_space<vmem>>, %arg10: memref<2x8xf32, #tpu.memory_space<smem>>, %arg11: memref<1x16xf32, #tpu.memory_space<vmem>>, %arg12: memref<32x128xbf16, #tpu.memory_space<vmem>>, %arg13: memref<1x16xf32, #tpu.memory_space<vmem>>, %arg14: memref<1x16xf32, #tpu.memory_space<vmem>>, %arg15: memref<32x16xf32, #tpu.memory_space<vmem>>, %arg16: memref<32x16xf32, #tpu.memory_space<vmem>>) attributes {dimension_semantics = [#tpu.dimension_semantics<parallel>], iteration_bounds = array<i64: 4>, scalar_prefetch = 0 : i64, scratch_operands = 1 : i64, tpu.core_type = #tpu.core_type<tc>, window_params = [{pipeline_mode = #tpu.pipeline_mode<synchronous>, transform_indices = @transform_0, window_bounds = array<i64: 128, 4>}, {pipeline_mode = #tpu.pipeline_mode<synchronous>, transform_indices = @transform_1, window_bounds = array<i64: 4, 128>}, {transform_indices = @transform_2, window_bounds = array<i64: 32, 4>}, {pipeline_mode = #tpu.pipeline_mode<synchronous>, transform_indices = @transform_3, window_bounds = array<i64: 4, 16>}, {pipeline_mode = #tpu.pipeline_mode<synchronous>, transform_indices = @transform_4, window_bounds = array<i64: 16, 4>}, {pipeline_mode = #tpu.pipeline_mode<synchronous>, transform_indices = @transform_5, window_bounds = array<i64: 4, 16>}, {pipeline_mode = #tpu.pipeline_mode<synchronous>, transform_indices = @transform_6, window_bounds = array<i64: 1, 16>}, {pipeline_mode = #tpu.pipeline_mode<synchronous>, transform_indices = @transform_7, window_bounds = array<i64: 16, 1>}, {pipeline_mode = #tpu.pipeline_mode<synchronous>, transform_indices = @transform_8, window_bounds = array<i64: 1, 16>}, {transform_indices = @transform_9, window_bounds = array<i64: 2, 8>}, {pipeline_mode = #tpu.pipeline_mode<synchronous>, transform_indices = @transform_10, window_bounds = array<i64: 1, 16>}, {transform_indices = @transform_11, window_bounds = array<i64: 32, 128>}, {pipeline_mode = #tpu.pipeline_mode<synchronous>, transform_indices = @transform_12, window_bounds = array<i64: 1, 16>}, {pipeline_mode = #tpu.pipeline_mode<synchronous>, transform_indices = @transform_13, window_bounds = array<i64: 1, 16>}, {transform_indices = @transform_14, window_bounds = array<i64: 32, 16>}]} {
    %c0 = arith.constant 0 : index
    %c0_0 = arith.constant 0 : index
    %0 = vector.load %arg1[%c0, %c0_0] : memref<128x4xf32, #tpu.memory_space<vmem>>, vector<128x4xf32>
    %c0_1 = arith.constant 0 : index
    %c0_2 = arith.constant 0 : index
    %1 = vector.load %arg4[%c0_1, %c0_2] : memref<4x16xf32, #tpu.memory_space<vmem>>, vector<4x16xf32>
    %cst = arith.constant dense<0.000000e+00> : vector<128x16xf32>
    %2 = tpu.matmul %0, %1, %cst {dimension_numbers = #tpu.dot_dimension_numbers<[1], [0], [0], [1], [0, 0, 1, 1], [], []>} : vector<128x4xf32>, vector<4x16xf32>, vector<128x16xf32> -> vector<128x16xf32>
    %c0_3 = arith.constant 0 : index
    %c0_4 = arith.constant 0 : index
    %3 = vector.load %arg7[%c0_3, %c0_4] : memref<1x16xf32, #tpu.memory_space<vmem>>, vector<1x16xf32>
    %4 = vector.broadcast %3 : vector<1x16xf32> to vector<128x16xf32>
    %5 = arith.addf %2, %4 : vector<128x16xf32>
    %c0_5 = arith.constant 0 : index
    %c0_6 = arith.constant 0 : index
    %6 = vector.load %arg5[%c0_5, %c0_6] : memref<16x4xf32, #tpu.memory_space<vmem>>, vector<16x4xf32>
    %c0_7 = arith.constant 0 : index
    %c0_8 = arith.constant 0 : index
    %7 = vector.load %arg2[%c0_7, %c0_8] : memref<4x128xf32, #tpu.memory_space<vmem>>, vector<4x128xf32>
    %cst_9 = arith.constant dense<0.000000e+00> : vector<16x128xf32>
    %8 = tpu.matmul %6, %7, %cst_9 {dimension_numbers = #tpu.dot_dimension_numbers<[1], [0], [0], [1], [0, 0, 1, 1], [], []>} : vector<16x4xf32>, vector<4x128xf32>, vector<16x128xf32> -> vector<16x128xf32>
    %c0_10 = arith.constant 0 : index
    %c0_11 = arith.constant 0 : index
    %9 = vector.load %arg8[%c0_10, %c0_11] : memref<16x1xf32, #tpu.memory_space<vmem>>, vector<16x1xf32>
    %10 = vector.broadcast %9 : vector<16x1xf32> to vector<16x128xf32>
    %11 = arith.addf %8, %10 : vector<16x128xf32>
    %c0_12 = arith.constant 0 : index
    %c0_13 = arith.constant 0 : index
    %12 = vector.load %arg3[%c0_12, %c0_13] : memref<32x4xf32, #tpu.memory_space<vmem>>, vector<32x4xf32>
    %c0_14 = arith.constant 0 : index
    %c0_15 = arith.constant 0 : index
    %13 = vector.load %arg6[%c0_14, %c0_15] : memref<4x16xf32, #tpu.memory_space<vmem>>, vector<4x16xf32>
    %cst_16 = arith.constant dense<0.000000e+00> : vector<32x16xf32>
    %14 = tpu.matmul %12, %13, %cst_16 {dimension_numbers = #tpu.dot_dimension_numbers<[1], [0], [0], [1], [0, 0, 1, 1], [], []>} : vector<32x4xf32>, vector<4x16xf32>, vector<32x16xf32> -> vector<32x16xf32>
    %c0_17 = arith.constant 0 : index
    %c0_18 = arith.constant 0 : index
    %15 = vector.load %arg9[%c0_17, %c0_18] : memref<1x16xf32, #tpu.memory_space<vmem>>, vector<1x16xf32>
    %16 = vector.broadcast %15 : vector<1x16xf32> to vector<32x16xf32>
    %17 = arith.addf %14, %16 : vector<32x16xf32>
    %c0_19 = arith.constant 0 : index
    %c0_20 = arith.constant 0 : index
    %18 = vector.load %arg12[%c0_19, %c0_20] : memref<32x128xbf16, #tpu.memory_space<vmem>>, vector<32x128xbf16>
    %19 = arith.extf %18 : vector<32x128xbf16> to vector<32x128xf32>
    %20 = vector.extract_strided_slice %17 {offsets = [0, 0], sizes = [32, 1], strides = [1, 1]} : vector<32x16xf32> to vector<32x1xf32>
    %21 = vector.extract_strided_slice %11 {offsets = [0, 0], sizes = [1, 128], strides = [1, 1]} : vector<16x128xf32> to vector<1x128xf32>
    %22 = vector.broadcast %20 : vector<32x1xf32> to vector<32x128xf32>
    %23 = vector.broadcast %21 : vector<1x128xf32> to vector<32x128xf32>
    %24 = arith.addf %22, %23 : vector<32x128xf32>
    %cst_21 = arith.constant 0.000000e+00 : f32
    %25 = vector.broadcast %cst_21 : f32 to vector<32x128xf32>
    %26 = arith.cmpf ogt, %24, %25 : vector<32x128xf32>
    %cst_22 = arith.constant 2.000000e-01 : f32
    %27 = vector.broadcast %cst_22 : f32 to vector<32x128xf32>
    %28 = arith.mulf %27, %24 : vector<32x128xf32>
    %29 = arith.select %26, %24, %28 : vector<32x128xi1>, vector<32x128xf32>
    %c0_23 = arith.constant 0 : index
    %c0_24 = arith.constant 0 : index
    %30 = memref.load %arg10[%c0_23, %c0_24] : memref<2x8xf32, #tpu.memory_space<smem>>
    %31 = vector.broadcast %30 : f32 to vector<32x128xf32>
    %32 = arith.mulf %31, %29 : vector<32x128xf32>
    %33 = arith.addf %19, %32 : vector<32x128xf32>
    %34 = vector.extract_strided_slice %17 {offsets = [0, 1], sizes = [32, 1], strides = [1, 1]} : vector<32x16xf32> to vector<32x1xf32>
    %35 = vector.extract_strided_slice %11 {offsets = [1, 0], sizes = [1, 128], strides = [1, 1]} : vector<16x128xf32> to vector<1x128xf32>
    %36 = vector.broadcast %34 : vector<32x1xf32> to vector<32x128xf32>
    %37 = vector.broadcast %35 : vector<1x128xf32> to vector<32x128xf32>
    %38 = arith.addf %36, %37 : vector<32x128xf32>
    %cst_25 = arith.constant 0.000000e+00 : f32
    %39 = vector.broadcast %cst_25 : f32 to vector<32x128xf32>
    %40 = arith.cmpf ogt, %38, %39 : vector<32x128xf32>
    %cst_26 = arith.constant 2.000000e-01 : f32
    %41 = vector.broadcast %cst_26 : f32 to vector<32x128xf32>
    %42 = arith.mulf %41, %38 : vector<32x128xf32>
    %43 = arith.select %40, %38, %42 : vector<32x128xi1>, vector<32x128xf32>
    %c0_27 = arith.constant 0 : index
    %c1 = arith.constant 1 : index
    %44 = memref.load %arg10[%c0_27, %c1] : memref<2x8xf32, #tpu.memory_space<smem>>
    %45 = vector.broadcast %44 : f32 to vector<32x128xf32>
    %46 = arith.mulf %45, %43 : vector<32x128xf32>
    %47 = arith.addf %33, %46 : vector<32x128xf32>
    %48 = vector.extract_strided_slice %17 {offsets = [0, 2], sizes = [32, 1], strides = [1, 1]} : vector<32x16xf32> to vector<32x1xf32>
    %49 = vector.extract_strided_slice %11 {offsets = [2, 0], sizes = [1, 128], strides = [1, 1]} : vector<16x128xf32> to vector<1x128xf32>
    %50 = vector.broadcast %48 : vector<32x1xf32> to vector<32x128xf32>
    %51 = vector.broadcast %49 : vector<1x128xf32> to vector<32x128xf32>
    %52 = arith.addf %50, %51 : vector<32x128xf32>
    %cst_28 = arith.constant 0.000000e+00 : f32
    %53 = vector.broadcast %cst_28 : f32 to vector<32x128xf32>
    %54 = arith.cmpf ogt, %52, %53 : vector<32x128xf32>
    %cst_29 = arith.constant 2.000000e-01 : f32
    %55 = vector.broadcast %cst_29 : f32 to vector<32x128xf32>
    %56 = arith.mulf %55, %52 : vector<32x128xf32>
    %57 = arith.select %54, %52, %56 : vector<32x128xi1>, vector<32x128xf32>
    %c0_30 = arith.constant 0 : index
    %c2 = arith.constant 2 : index
    %58 = memref.load %arg10[%c0_30, %c2] : memref<2x8xf32, #tpu.memory_space<smem>>
    %59 = vector.broadcast %58 : f32 to vector<32x128xf32>
    %60 = arith.mulf %59, %57 : vector<32x128xf32>
    %61 = arith.addf %47, %60 : vector<32x128xf32>
    %62 = vector.extract_strided_slice %17 {offsets = [0, 3], sizes = [32, 1], strides = [1, 1]} : vector<32x16xf32> to vector<32x1xf32>
    %63 = vector.extract_strided_slice %11 {offsets = [3, 0], sizes = [1, 128], strides = [1, 1]} : vector<16x128xf32> to vector<1x128xf32>
    %64 = vector.broadcast %62 : vector<32x1xf32> to vector<32x128xf32>
    %65 = vector.broadcast %63 : vector<1x128xf32> to vector<32x128xf32>
    %66 = arith.addf %64, %65 : vector<32x128xf32>
    %cst_31 = arith.constant 0.000000e+00 : f32
    %67 = vector.broadcast %cst_31 : f32 to vector<32x128xf32>
    %68 = arith.cmpf ogt, %66, %67 : vector<32x128xf32>
    %cst_32 = arith.constant 2.000000e-01 : f32
    %69 = vector.broadcast %cst_32 : f32 to vector<32x128xf32>
    %70 = arith.mulf %69, %66 : vector<32x128xf32>
    %71 = arith.select %68, %66, %70 : vector<32x128xi1>, vector<32x128xf32>
    %c0_33 = arith.constant 0 : index
    %c3 = arith.constant 3 : index
    %72 = memref.load %arg10[%c0_33, %c3] : memref<2x8xf32, #tpu.memory_space<smem>>
    %73 = vector.broadcast %72 : f32 to vector<32x128xf32>
    %74 = arith.mulf %73, %71 : vector<32x128xf32>
    %75 = arith.addf %61, %74 : vector<32x128xf32>
    %76 = vector.extract_strided_slice %17 {offsets = [0, 4], sizes = [32, 1], strides = [1, 1]} : vector<32x16xf32> to vector<32x1xf32>
    %77 = vector.extract_strided_slice %11 {offsets = [4, 0], sizes = [1, 128], strides = [1, 1]} : vector<16x128xf32> to vector<1x128xf32>
    %78 = vector.broadcast %76 : vector<32x1xf32> to vector<32x128xf32>
    %79 = vector.broadcast %77 : vector<1x128xf32> to vector<32x128xf32>
    %80 = arith.addf %78, %79 : vector<32x128xf32>
    %cst_34 = arith.constant 0.000000e+00 : f32
    %81 = vector.broadcast %cst_34 : f32 to vector<32x128xf32>
    %82 = arith.cmpf ogt, %80, %81 : vector<32x128xf32>
    %cst_35 = arith.constant 2.000000e-01 : f32
    %83 = vector.broadcast %cst_35 : f32 to vector<32x128xf32>
    %84 = arith.mulf %83, %80 : vector<32x128xf32>
    %85 = arith.select %82, %80, %84 : vector<32x128xi1>, vector<32x128xf32>
    %c0_36 = arith.constant 0 : index
    %c4 = arith.constant 4 : index
    %86 = memref.load %arg10[%c0_36, %c4] : memref<2x8xf32, #tpu.memory_space<smem>>
    %87 = vector.broadcast %86 : f32 to vector<32x128xf32>
    %88 = arith.mulf %87, %85 : vector<32x128xf32>
    %89 = arith.addf %75, %88 : vector<32x128xf32>
    %90 = vector.extract_strided_slice %17 {offsets = [0, 5], sizes = [32, 1], strides = [1, 1]} : vector<32x16xf32> to vector<32x1xf32>
    %91 = vector.extract_strided_slice %11 {offsets = [5, 0], sizes = [1, 128], strides = [1, 1]} : vector<16x128xf32> to vector<1x128xf32>
    %92 = vector.broadcast %90 : vector<32x1xf32> to vector<32x128xf32>
    %93 = vector.broadcast %91 : vector<1x128xf32> to vector<32x128xf32>
    %94 = arith.addf %92, %93 : vector<32x128xf32>
    %cst_37 = arith.constant 0.000000e+00 : f32
    %95 = vector.broadcast %cst_37 : f32 to vector<32x128xf32>
    %96 = arith.cmpf ogt, %94, %95 : vector<32x128xf32>
    %cst_38 = arith.constant 2.000000e-01 : f32
    %97 = vector.broadcast %cst_38 : f32 to vector<32x128xf32>
    %98 = arith.mulf %97, %94 : vector<32x128xf32>
    %99 = arith.select %96, %94, %98 : vector<32x128xi1>, vector<32x128xf32>
    %c0_39 = arith.constant 0 : index
    %c5 = arith.constant 5 : index
    %100 = memref.load %arg10[%c0_39, %c5] : memref<2x8xf32, #tpu.memory_space<smem>>
    %101 = vector.broadcast %100 : f32 to vector<32x128xf32>
    %102 = arith.mulf %101, %99 : vector<32x128xf32>
    %103 = arith.addf %89, %102 : vector<32x128xf32>
    %104 = vector.extract_strided_slice %17 {offsets = [0, 6], sizes = [32, 1], strides = [1, 1]} : vector<32x16xf32> to vector<32x1xf32>
    %105 = vector.extract_strided_slice %11 {offsets = [6, 0], sizes = [1, 128], strides = [1, 1]} : vector<16x128xf32> to vector<1x128xf32>
    %106 = vector.broadcast %104 : vector<32x1xf32> to vector<32x128xf32>
    %107 = vector.broadcast %105 : vector<1x128xf32> to vector<32x128xf32>
    %108 = arith.addf %106, %107 : vector<32x128xf32>
    %cst_40 = arith.constant 0.000000e+00 : f32
    %109 = vector.broadcast %cst_40 : f32 to vector<32x128xf32>
    %110 = arith.cmpf ogt, %108, %109 : vector<32x128xf32>
    %cst_41 = arith.constant 2.000000e-01 : f32
    %111 = vector.broadcast %cst_41 : f32 to vector<32x128xf32>
    %112 = arith.mulf %111, %108 : vector<32x128xf32>
    %113 = arith.select %110, %108, %112 : vector<32x128xi1>, vector<32x128xf32>
    %c0_42 = arith.constant 0 : index
    %c6 = arith.constant 6 : index
    %114 = memref.load %arg10[%c0_42, %c6] : memref<2x8xf32, #tpu.memory_space<smem>>
    %115 = vector.broadcast %114 : f32 to vector<32x128xf32>
    %116 = arith.mulf %115, %113 : vector<32x128xf32>
    %117 = arith.addf %103, %116 : vector<32x128xf32>
    %118 = vector.extract_strided_slice %17 {offsets = [0, 7], sizes = [32, 1], strides = [1, 1]} : vector<32x16xf32> to vector<32x1xf32>
    %119 = vector.extract_strided_slice %11 {offsets = [7, 0], sizes = [1, 128], strides = [1, 1]} : vector<16x128xf32> to vector<1x128xf32>
    %120 = vector.broadcast %118 : vector<32x1xf32> to vector<32x128xf32>
    %121 = vector.broadcast %119 : vector<1x128xf32> to vector<32x128xf32>
    %122 = arith.addf %120, %121 : vector<32x128xf32>
    %cst_43 = arith.constant 0.000000e+00 : f32
    %123 = vector.broadcast %cst_43 : f32 to vector<32x128xf32>
    %124 = arith.cmpf ogt, %122, %123 : vector<32x128xf32>
    %cst_44 = arith.constant 2.000000e-01 : f32
    %125 = vector.broadcast %cst_44 : f32 to vector<32x128xf32>
    %126 = arith.mulf %125, %122 : vector<32x128xf32>
    %127 = arith.select %124, %122, %126 : vector<32x128xi1>, vector<32x128xf32>
    %c0_45 = arith.constant 0 : index
    %c7 = arith.constant 7 : index
    %128 = memref.load %arg10[%c0_45, %c7] : memref<2x8xf32, #tpu.memory_space<smem>>
    %129 = vector.broadcast %128 : f32 to vector<32x128xf32>
    %130 = arith.mulf %129, %127 : vector<32x128xf32>
    %131 = arith.addf %117, %130 : vector<32x128xf32>
    %cst_46 = arith.constant dense<0xFF800000> : vector<32xf32>
    %132 = vector.multi_reduction <maximumf>, %131, %cst_46 [1] : vector<32x128xf32> to vector<32xf32>
    %133 = vector.shape_cast %132 : vector<32xf32> to vector<32x1xf32>
    %134 = vector.broadcast %133 : vector<32x1xf32> to vector<32x128xf32>
    %135 = arith.subf %131, %134 : vector<32x128xf32>
    %136 = math.exp %135 : vector<32x128xf32>
    %cst_47 = arith.constant dense<0.000000e+00> : vector<32xf32>
    %137 = vector.multi_reduction <add>, %136, %cst_47 [1] : vector<32x128xf32> to vector<32xf32>
    %138 = vector.shape_cast %137 : vector<32xf32> to vector<32x1xf32>
    %139 = vector.extract_strided_slice %5 {offsets = [0, 0], sizes = [128, 8], strides = [1, 1]} : vector<128x16xf32> to vector<128x8xf32>
    %cst_48 = arith.constant dense<0.000000e+00> : vector<32x8xf32>
    %140 = tpu.matmul %136, %139, %cst_48 {dimension_numbers = #tpu.dot_dimension_numbers<[1], [0], [0], [1], [0, 0, 1, 1], [], []>} : vector<32x128xf32>, vector<128x8xf32>, vector<32x8xf32> -> vector<32x8xf32>
    %141 = tpu.reciprocal %138 {approx = true} : vector<32x1xf32> -> vector<32x1xf32>
    %142 = vector.broadcast %141 : vector<32x1xf32> to vector<32x8xf32>
    %143 = arith.mulf %140, %142 : vector<32x8xf32>
    %c0_49 = arith.constant 0 : index
    %c0_50 = arith.constant 0 : index
    %144 = vector.load %arg16[%c0_49, %c0_50] : memref<32x16xf32, #tpu.memory_space<vmem>>, vector<32x8xf32>
    tpu.vector_store %arg16[%c0_49, %c0_50], %143 {strides = array<i32>} : memref<32x16xf32, #tpu.memory_space<vmem>>, vector<32x8xf32>,
    %145 = vector.extract_strided_slice %17 {offsets = [0, 8], sizes = [32, 1], strides = [1, 1]} : vector<32x16xf32> to vector<32x1xf32>
    %146 = vector.extract_strided_slice %11 {offsets = [8, 0], sizes = [1, 128], strides = [1, 1]} : vector<16x128xf32> to vector<1x128xf32>
    %147 = vector.broadcast %145 : vector<32x1xf32> to vector<32x128xf32>
    %148 = vector.broadcast %146 : vector<1x128xf32> to vector<32x128xf32>
    %149 = arith.addf %147, %148 : vector<32x128xf32>
    %cst_51 = arith.constant 0.000000e+00 : f32
    %150 = vector.broadcast %cst_51 : f32 to vector<32x128xf32>
    %151 = arith.cmpf ogt, %149, %150 : vector<32x128xf32>
    %cst_52 = arith.constant 2.000000e-01 : f32
    %152 = vector.broadcast %cst_52 : f32 to vector<32x128xf32>
    %153 = arith.mulf %152, %149 : vector<32x128xf32>
    %154 = arith.select %151, %149, %153 : vector<32x128xi1>, vector<32x128xf32>
    %c1_53 = arith.constant 1 : index
    %c0_54 = arith.constant 0 : index
    %155 = memref.load %arg10[%c1_53, %c0_54] : memref<2x8xf32, #tpu.memory_space<smem>>
    %156 = vector.broadcast %155 : f32 to vector<32x128xf32>
    %157 = arith.mulf %156, %154 : vector<32x128xf32>
    %158 = arith.addf %19, %157 : vector<32x128xf32>
    %159 = vector.extract_strided_slice %17 {offsets = [0, 9], sizes = [32, 1], strides = [1, 1]} : vector<32x16xf32> to vector<32x1xf32>
    %160 = vector.extract_strided_slice %11 {offsets = [9, 0], sizes = [1, 128], strides = [1, 1]} : vector<16x128xf32> to vector<1x128xf32>
    %161 = vector.broadcast %159 : vector<32x1xf32> to vector<32x128xf32>
    %162 = vector.broadcast %160 : vector<1x128xf32> to vector<32x128xf32>
    %163 = arith.addf %161, %162 : vector<32x128xf32>
    %cst_55 = arith.constant 0.000000e+00 : f32
    %164 = vector.broadcast %cst_55 : f32 to vector<32x128xf32>
    %165 = arith.cmpf ogt, %163, %164 : vector<32x128xf32>
    %cst_56 = arith.constant 2.000000e-01 : f32
    %166 = vector.broadcast %cst_56 : f32 to vector<32x128xf32>
    %167 = arith.mulf %166, %163 : vector<32x128xf32>
    %168 = arith.select %165, %163, %167 : vector<32x128xi1>, vector<32x128xf32>
    %c1_57 = arith.constant 1 : index
    %c1_58 = arith.constant 1 : index
    %169 = memref.load %arg10[%c1_57, %c1_58] : memref<2x8xf32, #tpu.memory_space<smem>>
    %170 = vector.broadcast %169 : f32 to vector<32x128xf32>
    %171 = arith.mulf %170, %168 : vector<32x128xf32>
    %172 = arith.addf %158, %171 : vector<32x128xf32>
    %173 = vector.extract_strided_slice %17 {offsets = [0, 10], sizes = [32, 1], strides = [1, 1]} : vector<32x16xf32> to vector<32x1xf32>
    %174 = vector.extract_strided_slice %11 {offsets = [10, 0], sizes = [1, 128], strides = [1, 1]} : vector<16x128xf32> to vector<1x128xf32>
    %175 = vector.broadcast %173 : vector<32x1xf32> to vector<32x128xf32>
    %176 = vector.broadcast %174 : vector<1x128xf32> to vector<32x128xf32>
    %177 = arith.addf %175, %176 : vector<32x128xf32>
    %cst_59 = arith.constant 0.000000e+00 : f32
    %178 = vector.broadcast %cst_59 : f32 to vector<32x128xf32>
    %179 = arith.cmpf ogt, %177, %178 : vector<32x128xf32>
    %cst_60 = arith.constant 2.000000e-01 : f32
    %180 = vector.broadcast %cst_60 : f32 to vector<32x128xf32>
    %181 = arith.mulf %180, %177 : vector<32x128xf32>
    %182 = arith.select %179, %177, %181 : vector<32x128xi1>, vector<32x128xf32>
    %c1_61 = arith.constant 1 : index
    %c2_62 = arith.constant 2 : index
    %183 = memref.load %arg10[%c1_61, %c2_62] : memref<2x8xf32, #tpu.memory_space<smem>>
    %184 = vector.broadcast %183 : f32 to vector<32x128xf32>
    %185 = arith.mulf %184, %182 : vector<32x128xf32>
    %186 = arith.addf %172, %185 : vector<32x128xf32>
    %187 = vector.extract_strided_slice %17 {offsets = [0, 11], sizes = [32, 1], strides = [1, 1]} : vector<32x16xf32> to vector<32x1xf32>
    %188 = vector.extract_strided_slice %11 {offsets = [11, 0], sizes = [1, 128], strides = [1, 1]} : vector<16x128xf32> to vector<1x128xf32>
    %189 = vector.broadcast %187 : vector<32x1xf32> to vector<32x128xf32>
    %190 = vector.broadcast %188 : vector<1x128xf32> to vector<32x128xf32>
    %191 = arith.addf %189, %190 : vector<32x128xf32>
    %cst_63 = arith.constant 0.000000e+00 : f32
    %192 = vector.broadcast %cst_63 : f32 to vector<32x128xf32>
    %193 = arith.cmpf ogt, %191, %192 : vector<32x128xf32>
    %cst_64 = arith.constant 2.000000e-01 : f32
    %194 = vector.broadcast %cst_64 : f32 to vector<32x128xf32>
    %195 = arith.mulf %194, %191 : vector<32x128xf32>
    %196 = arith.select %193, %191, %195 : vector<32x128xi1>, vector<32x128xf32>
    %c1_65 = arith.constant 1 : index
    %c3_66 = arith.constant 3 : index
    %197 = memref.load %arg10[%c1_65, %c3_66] : memref<2x8xf32, #tpu.memory_space<smem>>
    %198 = vector.broadcast %197 : f32 to vector<32x128xf32>
    %199 = arith.mulf %198, %196 : vector<32x128xf32>
    %200 = arith.addf %186, %199 : vector<32x128xf32>
    %201 = vector.extract_strided_slice %17 {offsets = [0, 12], sizes = [32, 1], strides = [1, 1]} : vector<32x16xf32> to vector<32x1xf32>
    %202 = vector.extract_strided_slice %11 {offsets = [12, 0], sizes = [1, 128], strides = [1, 1]} : vector<16x128xf32> to vector<1x128xf32>
    %203 = vector.broadcast %201 : vector<32x1xf32> to vector<32x128xf32>
    %204 = vector.broadcast %202 : vector<1x128xf32> to vector<32x128xf32>
    %205 = arith.addf %203, %204 : vector<32x128xf32>
    %cst_67 = arith.constant 0.000000e+00 : f32
    %206 = vector.broadcast %cst_67 : f32 to vector<32x128xf32>
    %207 = arith.cmpf ogt, %205, %206 : vector<32x128xf32>
    %cst_68 = arith.constant 2.000000e-01 : f32
    %208 = vector.broadcast %cst_68 : f32 to vector<32x128xf32>
    %209 = arith.mulf %208, %205 : vector<32x128xf32>
    %210 = arith.select %207, %205, %209 : vector<32x128xi1>, vector<32x128xf32>
    %c1_69 = arith.constant 1 : index
    %c4_70 = arith.constant 4 : index
    %211 = memref.load %arg10[%c1_69, %c4_70] : memref<2x8xf32, #tpu.memory_space<smem>>
    %212 = vector.broadcast %211 : f32 to vector<32x128xf32>
    %213 = arith.mulf %212, %210 : vector<32x128xf32>
    %214 = arith.addf %200, %213 : vector<32x128xf32>
    %215 = vector.extract_strided_slice %17 {offsets = [0, 13], sizes = [32, 1], strides = [1, 1]} : vector<32x16xf32> to vector<32x1xf32>
    %216 = vector.extract_strided_slice %11 {offsets = [13, 0], sizes = [1, 128], strides = [1, 1]} : vector<16x128xf32> to vector<1x128xf32>
    %217 = vector.broadcast %215 : vector<32x1xf32> to vector<32x128xf32>
    %218 = vector.broadcast %216 : vector<1x128xf32> to vector<32x128xf32>
    %219 = arith.addf %217, %218 : vector<32x128xf32>
    %cst_71 = arith.constant 0.000000e+00 : f32
    %220 = vector.broadcast %cst_71 : f32 to vector<32x128xf32>
    %221 = arith.cmpf ogt, %219, %220 : vector<32x128xf32>
    %cst_72 = arith.constant 2.000000e-01 : f32
    %222 = vector.broadcast %cst_72 : f32 to vector<32x128xf32>
    %223 = arith.mulf %222, %219 : vector<32x128xf32>
    %224 = arith.select %221, %219, %223 : vector<32x128xi1>, vector<32x128xf32>
    %c1_73 = arith.constant 1 : index
    %c5_74 = arith.constant 5 : index
    %225 = memref.load %arg10[%c1_73, %c5_74] : memref<2x8xf32, #tpu.memory_space<smem>>
    %226 = vector.broadcast %225 : f32 to vector<32x128xf32>
    %227 = arith.mulf %226, %224 : vector<32x128xf32>
    %228 = arith.addf %214, %227 : vector<32x128xf32>
    %229 = vector.extract_strided_slice %17 {offsets = [0, 14], sizes = [32, 1], strides = [1, 1]} : vector<32x16xf32> to vector<32x1xf32>
    %230 = vector.extract_strided_slice %11 {offsets = [14, 0], sizes = [1, 128], strides = [1, 1]} : vector<16x128xf32> to vector<1x128xf32>
    %231 = vector.broadcast %229 : vector<32x1xf32> to vector<32x128xf32>
    %232 = vector.broadcast %230 : vector<1x128xf32> to vector<32x128xf32>
    %233 = arith.addf %231, %232 : vector<32x128xf32>
    %cst_75 = arith.constant 0.000000e+00 : f32
    %234 = vector.broadcast %cst_75 : f32 to vector<32x128xf32>
    %235 = arith.cmpf ogt, %233, %234 : vector<32x128xf32>
    %cst_76 = arith.constant 2.000000e-01 : f32
    %236 = vector.broadcast %cst_76 : f32 to vector<32x128xf32>
    %237 = arith.mulf %236, %233 : vector<32x128xf32>
    %238 = arith.select %235, %233, %237 : vector<32x128xi1>, vector<32x128xf32>
    %c1_77 = arith.constant 1 : index
    %c6_78 = arith.constant 6 : index
    %239 = memref.load %arg10[%c1_77, %c6_78] : memref<2x8xf32, #tpu.memory_space<smem>>
    %240 = vector.broadcast %239 : f32 to vector<32x128xf32>
    %241 = arith.mulf %240, %238 : vector<32x128xf32>
    %242 = arith.addf %228, %241 : vector<32x128xf32>
    %243 = vector.extract_strided_slice %17 {offsets = [0, 15], sizes = [32, 1], strides = [1, 1]} : vector<32x16xf32> to vector<32x1xf32>
    %244 = vector.extract_strided_slice %11 {offsets = [15, 0], sizes = [1, 128], strides = [1, 1]} : vector<16x128xf32> to vector<1x128xf32>
    %245 = vector.broadcast %243 : vector<32x1xf32> to vector<32x128xf32>
    %246 = vector.broadcast %244 : vector<1x128xf32> to vector<32x128xf32>
    %247 = arith.addf %245, %246 : vector<32x128xf32>
    %cst_79 = arith.constant 0.000000e+00 : f32
    %248 = vector.broadcast %cst_79 : f32 to vector<32x128xf32>
    %249 = arith.cmpf ogt, %247, %248 : vector<32x128xf32>
    %cst_80 = arith.constant 2.000000e-01 : f32
    %250 = vector.broadcast %cst_80 : f32 to vector<32x128xf32>
    %251 = arith.mulf %250, %247 : vector<32x128xf32>
    %252 = arith.select %249, %247, %251 : vector<32x128xi1>, vector<32x128xf32>
    %c1_81 = arith.constant 1 : index
    %c7_82 = arith.constant 7 : index
    %253 = memref.load %arg10[%c1_81, %c7_82] : memref<2x8xf32, #tpu.memory_space<smem>>
    %254 = vector.broadcast %253 : f32 to vector<32x128xf32>
    %255 = arith.mulf %254, %252 : vector<32x128xf32>
    %256 = arith.addf %242, %255 : vector<32x128xf32>
    %cst_83 = arith.constant dense<0xFF800000> : vector<32xf32>
    %257 = vector.multi_reduction <maximumf>, %256, %cst_83 [1] : vector<32x128xf32> to vector<32xf32>
    %258 = vector.shape_cast %257 : vector<32xf32> to vector<32x1xf32>
    %259 = vector.broadcast %258 : vector<32x1xf32> to vector<32x128xf32>
    %260 = arith.subf %256, %259 : vector<32x128xf32>
    %261 = math.exp %260 : vector<32x128xf32>
    %cst_84 = arith.constant dense<0.000000e+00> : vector<32xf32>
    %262 = vector.multi_reduction <add>, %261, %cst_84 [1] : vector<32x128xf32> to vector<32xf32>
    %263 = vector.shape_cast %262 : vector<32xf32> to vector<32x1xf32>
    %264 = vector.extract_strided_slice %5 {offsets = [0, 8], sizes = [128, 8], strides = [1, 1]} : vector<128x16xf32> to vector<128x8xf32>
    %cst_85 = arith.constant dense<0.000000e+00> : vector<32x8xf32>
    %265 = tpu.matmul %261, %264, %cst_85 {dimension_numbers = #tpu.dot_dimension_numbers<[1], [0], [0], [1], [0, 0, 1, 1], [], []>} : vector<32x128xf32>, vector<128x8xf32>, vector<32x8xf32> -> vector<32x8xf32>
    %266 = tpu.reciprocal %263 {approx = true} : vector<32x1xf32> -> vector<32x1xf32>
    %267 = vector.broadcast %266 : vector<32x1xf32> to vector<32x8xf32>
    %268 = arith.mulf %265, %267 : vector<32x8xf32>
    %c0_86 = arith.constant 0 : index
    %c8 = arith.constant 8 : index
    %269 = vector.load %arg16[%c0_86, %c8] : memref<32x16xf32, #tpu.memory_space<vmem>>, vector<32x8xf32>
    tpu.vector_store %arg16[%c0_86, %c8], %268 {strides = array<i32>} : memref<32x16xf32, #tpu.memory_space<vmem>>, vector<32x8xf32>,
    %c0_87 = arith.constant 0 : index
    %c0_88 = arith.constant 0 : index
    %270 = vector.load %arg16[%c0_87, %c0_88] : memref<32x16xf32, #tpu.memory_space<vmem>>, vector<32x16xf32>
    %c0_89 = arith.constant 0 : index
    %c0_90 = arith.constant 0 : index
    %271 = vector.load %arg11[%c0_89, %c0_90] : memref<1x16xf32, #tpu.memory_space<vmem>>, vector<1x16xf32>
    %272 = vector.broadcast %271 : vector<1x16xf32> to vector<32x16xf32>
    %273 = arith.addf %270, %272 : vector<32x16xf32>
    %cst_91 = arith.constant dense<0.000000e+00> : vector<32xf32>
    %274 = vector.multi_reduction <add>, %273, %cst_91 [1] : vector<32x16xf32> to vector<32xf32>
    %275 = vector.shape_cast %274 : vector<32xf32> to vector<32x1xf32>
    %cst_92 = arith.constant 1.600000e+01 : f32
    %276 = vector.broadcast %cst_92 : f32 to vector<32x1xf32>
    %277 = arith.divf %275, %276 : vector<32x1xf32>
    %278 = vector.broadcast %277 : vector<32x1xf32> to vector<32x16xf32>
    %279 = arith.subf %273, %278 : vector<32x16xf32>
    %280 = arith.mulf %279, %279 : vector<32x16xf32>
    %cst_93 = arith.constant dense<0.000000e+00> : vector<32xf32>
    %281 = vector.multi_reduction <add>, %280, %cst_93 [1] : vector<32x16xf32> to vector<32xf32>
    %282 = vector.shape_cast %281 : vector<32xf32> to vector<32x1xf32>
    %cst_94 = arith.constant 1.600000e+01 : f32
    %283 = vector.broadcast %cst_94 : f32 to vector<32x1xf32>
    %284 = arith.divf %282, %283 : vector<32x1xf32>
    %285 = vector.broadcast %277 : vector<32x1xf32> to vector<32x16xf32>
    %286 = arith.subf %273, %285 : vector<32x16xf32>
    %cst_95 = arith.constant 9.99999974E-6 : f32
    %287 = vector.broadcast %cst_95 : f32 to vector<32x1xf32>
    %288 = arith.addf %284, %287 : vector<32x1xf32>
    %289 = math.rsqrt %288 : vector<32x1xf32>
    %290 = vector.broadcast %289 : vector<32x1xf32> to vector<32x16xf32>
    %291 = arith.mulf %286, %290 : vector<32x16xf32>
    %c0_96 = arith.constant 0 : index
    %c0_97 = arith.constant 0 : index
    %292 = vector.load %arg13[%c0_96, %c0_97] : memref<1x16xf32, #tpu.memory_space<vmem>>, vector<1x16xf32>
    %293 = vector.broadcast %292 : vector<1x16xf32> to vector<32x16xf32>
    %294 = arith.mulf %291, %293 : vector<32x16xf32>
    %c0_98 = arith.constant 0 : index
    %c0_99 = arith.constant 0 : index
    %295 = vector.load %arg14[%c0_98, %c0_99] : memref<1x16xf32, #tpu.memory_space<vmem>>, vector<1x16xf32>
    %296 = vector.broadcast %295 : vector<1x16xf32> to vector<32x16xf32>
    %297 = arith.addf %294, %296 : vector<32x16xf32>
    %cst_100 = arith.constant 0.000000e+00 : f32
    %298 = vector.broadcast %cst_100 : f32 to vector<32x16xf32>
    %299 = arith.cmpf ogt, %297, %298 : vector<32x16xf32>
    %cst_101 = arith.constant 0.00999999977 : f32
    %300 = vector.broadcast %cst_101 : f32 to vector<32x16xf32>
    %301 = arith.mulf %300, %297 : vector<32x16xf32>
    %302 = arith.select %299, %297, %301 : vector<32x16xi1>, vector<32x16xf32>
    %c0_102 = arith.constant 0 : index
    %c0_103 = arith.constant 0 : index
    %303 = vector.load %arg15[%c0_102, %c0_103] : memref<32x16xf32, #tpu.memory_space<vmem>>, vector<32x16xf32>
    tpu.vector_store %arg15[%c0_102, %c0_103], %302 {strides = array<i32>} : memref<32x16xf32, #tpu.memory_space<vmem>>, vector<32x16xf32>,
    return
  }
  func.func @transform_0(%arg0: i32) -> (i32, i32) {
    %c0_i32 = arith.constant 0 : i32
    %c0_i32_0 = arith.constant 0 : i32
    %c0_i32_1 = arith.constant 0 : i32
    return %c0_i32, %c0_i32_0 : i32, i32
  }
  func.func @transform_1(%arg0: i32) -> (i32, i32) {
    %c0_i32 = arith.constant 0 : i32
    %c0_i32_0 = arith.constant 0 : i32
    %c0_i32_1 = arith.constant 0 : i32
    return %c0_i32, %c0_i32_0 : i32, i32
  }
  func.func @transform_2(%arg0: i32) -> (i32, i32) {
    %c0_i32 = arith.constant 0 : i32
    %c0_i32_0 = arith.constant 0 : i32
    return %arg0, %c0_i32 : i32, i32
  }
  func.func @transform_3(%arg0: i32) -> (i32, i32) {
    %c0_i32 = arith.constant 0 : i32
    %c0_i32_0 = arith.constant 0 : i32
    %c0_i32_1 = arith.constant 0 : i32
    return %c0_i32, %c0_i32_0 : i32, i32
  }
  func.func @transform_4(%arg0: i32) -> (i32, i32) {
    %c0_i32 = arith.constant 0 : i32
    %c0_i32_0 = arith.constant 0 : i32
    %c0_i32_1 = arith.constant 0 : i32
    return %c0_i32, %c0_i32_0 : i32, i32
  }
  func.func @transform_5(%arg0: i32) -> (i32, i32) {
    %c0_i32 = arith.constant 0 : i32
    %c0_i32_0 = arith.constant 0 : i32
    %c0_i32_1 = arith.constant 0 : i32
    return %c0_i32, %c0_i32_0 : i32, i32
  }
  func.func @transform_6(%arg0: i32) -> (i32, i32) {
    %c0_i32 = arith.constant 0 : i32
    %c0_i32_0 = arith.constant 0 : i32
    %c0_i32_1 = arith.constant 0 : i32
    return %c0_i32, %c0_i32_0 : i32, i32
  }
  func.func @transform_7(%arg0: i32) -> (i32, i32) {
    %c0_i32 = arith.constant 0 : i32
    %c0_i32_0 = arith.constant 0 : i32
    %c0_i32_1 = arith.constant 0 : i32
    return %c0_i32, %c0_i32_0 : i32, i32
  }
  func.func @transform_8(%arg0: i32) -> (i32, i32) {
    %c0_i32 = arith.constant 0 : i32
    %c0_i32_0 = arith.constant 0 : i32
    %c0_i32_1 = arith.constant 0 : i32
    return %c0_i32, %c0_i32_0 : i32, i32
  }
  func.func @transform_9(%arg0: i32) -> (i32, i32) {
    %c0_i32 = arith.constant 0 : i32
    %c0_i32_0 = arith.constant 0 : i32
    %c0_i32_1 = arith.constant 0 : i32
    return %c0_i32, %c0_i32_0 : i32, i32
  }
  func.func @transform_10(%arg0: i32) -> (i32, i32) {
    %c0_i32 = arith.constant 0 : i32
    %c0_i32_0 = arith.constant 0 : i32
    %c0_i32_1 = arith.constant 0 : i32
    return %c0_i32, %c0_i32_0 : i32, i32
  }
  func.func @transform_11(%arg0: i32) -> (i32, i32) {
    %c0_i32 = arith.constant 0 : i32
    %c0_i32_0 = arith.constant 0 : i32
    return %arg0, %c0_i32 : i32, i32
  }
  func.func @transform_12(%arg0: i32) -> (i32, i32) {
    %c0_i32 = arith.constant 0 : i32
    %c0_i32_0 = arith.constant 0 : i32
    %c0_i32_1 = arith.constant 0 : i32
    return %c0_i32, %c0_i32_0 : i32, i32
  }
  func.func @transform_13(%arg0: i32) -> (i32, i32) {
    %c0_i32 = arith.constant 0 : i32
    %c0_i32_0 = arith.constant 0 : i32
    %c0_i32_1 = arith.constant 0 : i32
    return %c0_i32, %c0_i32_0 : i32, i32
  }
  func.func @transform_14(%arg0: i32) -> (i32, i32) {
    %c0_i32 = arith.constant 0 : i32
    %c0_i32_0 = arith.constant 0 : i32
    return %arg0, %c0_i32 : i32, i32
  }
}

</mosaic_0001>

<bundles_post_ra>
// kernel: tpu_custom_call.1
= control target key start
LH: loop header
LB: loop body
LE: loop exit
PB: predicated region body
PF: predicated region fallthrough
CT: control target
= control target key end

     0   :  { %19 = vsyncpa [#allocation4], 0  ;;  %s2261_s29 = smov 0   ;;  %s3083_s0 = inlined_call_operand.vmem [shape: f32[128,4], index: 0, kind: input, shape index: {}]   ;;  %s3084_s1 = inlined_call_operand.vmem [shape: f32[4,128], index: 1, kind: input, shape index: {}]   ;;  %s3085_s2 = inlined_call_operand.vmem [shape: f32[128,4], index: 2, kind: input, shape index: {}]   ;;  %s3086_s3 = inlined_call_operand.vmem [shape: f32[4,16], index: 3, kind: input, shape index: {}]   ;;  %s3087_s4 = inlined_call_operand.vmem [shape: f32[16,4], index: 4, kind: input, shape index: {}]   ;;  %s3088_s5 = inlined_call_operand.vmem [shape: f32[4,16], index: 5, kind: input, shape index: {}]   ;;  %s3089_s6 = inlined_call_operand.vmem [shape: f32[1,16], index: 6, kind: input, shape index: {}]   ;;  %s3090_s7 = inlined_call_operand.vmem [shape: f32[16,1], index: 7, kind: input, shape index: {}]   ;;  %s3091_s8 = inlined_call_operand.vmem [shape: f32[1,16], index: 8, kind: input, shape index: {}]   ;;  %s3092_s9 = inlined_call_operand.vmem [shape: f32[2,8], index: 9, kind: input, shape index: {}]   ;;  %s3093_s10 = inlined_call_operand.vmem [shape: f32[1,16], index: 10, kind: input, shape index: {}]   ;;  %s3094_s11 = inlined_call_operand.vmem [shape: bf16[128,128], index: 11, kind: input, shape index: {}]   ;;  %s3095_s12 = inlined_call_operand.vmem [shape: f32[1,16], index: 12, kind: input, shape index: {}]   ;;  %s3096_s13 = inlined_call_operand.vmem [shape: f32[1,16], index: 13, kind: input, shape index: {}]   ;;  %s3097_s14 = inlined_call_operand.vmem [shape: f32[128,16], index: 14, kind: output, shape index: {}]  }
   0x1 LB: > { %s1886_s30 = sadd.s32 4294967295, %s2164_s29   ;;  %p1888_p0 = scmp.ge.s32.totalorder %s2164_s29, 1  ;;  %s2164_s29 = sphi %s2261_s29, %s25_s29  }
   0x2   : > { %p360_p1 = scmp.lt.s32.totalorder %s2164_s29, 5  ;;  %s396_s17 = sshll.u32 %s3092_s9, 4  ;;  %s397_s17 = int_to_ptr.vmem [resolvable:$true] %s396_s17 }
   0x3   : > { %p1959_p3 = scmp.eq.s32.totalorder %s1886_s30, 0  ;;  %s2166_s18 = smov [#allocation3]  }
   0x4   : > { %p361_p2 = pnand %p1888_p0, %p360_p1 }
   0x6   : > { %p1955_p4 = pneg %p361_p2  ;;  %436 = sbr.rel (%p361_p2) target bundleno = 1127 (0x467), region = 76 }
   0x8   : > { %p1956_p5 = pnand %p1959_p3, %p1955_p4 }
   0xa   : > { %1958 = dma.vmem_to_smem (!%p1956_p5), %s397_s17, 32, %s2166_s18, [#allocation4]  }
   0xb   : > { %2159 = dma.done.wait (%p1959_p3), [#allocation4], 32  }
   0xc   : > { %2161 = vsyncadd (%p1959_p3), [#allocation4], 4294967264 }
   0xd   : > { %443 = sfence }
   0xe   : > { %vm577_vm0 = vcmask 1043456   ;;  %v697_v0 = vld [vmem:[%s3088_s5] sm:$0xf]  ;;  %s1893_s21 = sshll.u32 %s1886_s30, 2  ;;  %vm528_vm1 = vcmask 31744   ;;  %v516_v4 = vld [vmem:[%s3083_s0 + $0x48] sm:$0xff] }
   0xf   : > { %v515_v1 = vld [vmem:[%s3083_s0 + $0x40] sm:$0xff]  ;;  %1919 = vmatpush.msk.msra.mxu3 %vm577_vm0, %v697_v0  ;;  %p490_p6 = scmp.lt.s32.totalorder %s1893_s21, 15  ;;  %v517_v6 = vld [vmem:[%s3083_s0 + $0x50] sm:$0xff]  ;;  %v518_v9 = vld [vmem:[%s3083_s0 + $0x58] sm:$0xff]  ;;  %v2167_v12 = vmov 0   ;;  %v2168_v21 = vmov 2  }
  0x10   : > { %v523_v2 = vld [vmem:[%s3086_s3] sm:$0xf]  ;;  %1989 = vset.pattern.permute.xlu0 %v2167_v12  ;;  %1990 = vset.pattern.permute.xlu1 %v2167_v12  ;;  %v647_v16 = vld [vmem:[%s3087_s4 + $0x8] sm:$0xff]  ;;  %v521_v19 = vld [vmem:[%s3083_s0 + $0x70] sm:$0xff]  ;;  %v2169_v22 = vmov 1   ;;  %v2170_v32 = vmov 4  }
  0x11   : > { %1950 = vmatpush.msk.msra.mxu2 %vm577_vm0, %v523_v2  ;;  %1899 = vmatpush.msk.msra.mxu0 %vm577_vm0, %v523_v2  ;;  %s3153_s21 = smov (!%p490_p6, %s1893_s21), 15  ;;  %v648_v7 = vld [vmem:[%s3084_s1] sm:$0xf]  ;;  %v650_v17 = vld [vmem:[%s3090_s7 + $0x8] sm:$0xff]  ;;  %v522_v20 = vld [vmem:[%s3083_s0 + $0x78] sm:$0xff]  ;;  %v3107_v33 = vmov 10  }
  0x12   : > { %1908 = vmatmul.msk.f32.vlgmr.msra.gmra.mxu2 %vm528_vm1, %v515_v1  ;;  %s1894_s26 = sshll.u32 %s3153_s21, 3  ;;  %1916 = vmatpush.msk.msra.mxu1 %vm577_vm0, %v648_v7  ;;  %v646_v10 = vld [vmem:[%s3087_s4] sm:$0xff]  ;;  %v520_v18 = vld [vmem:[%s3083_s0 + $0x68] sm:$0xff]  ;;  %v509_v24 = vld [vmem:[%s3083_s0 + $0x10] sm:$0xff]  ;;  %v3106_v35 = vmov 3   ;;  %v2173_v37 = vmov 9  }
  0x13   : > { %s493_s30 = scalar_lea.vmem %s3085_s2, %s1894_s26  ;;  %v649_v11 = vld [vmem:[%s3090_s7] sm:$0xff]  ;;  %1917 = vmatmul.msk.f32.vlgmr.msra.gmra.mxu1 %vm528_vm1, %v646_v10  ;;  %1992 = vset.pattern.permute.xlu2 %v2168_v21  ;;  %v508_v23 = vld [vmem:[%s3083_s0 + $0x8] sm:$0xff]  ;;  %v510_v25 = vld [vmem:[%s3083_s0 + $0x18] sm:$0xff]  ;;  %v3103_v39 = vmov 13   ;;  %v3098_v40 = vmov 5   ;;  %v3102_v44 = vmov 14  }
  0x14   : > { %v693_v3 = vld [vmem:[%s493_s30] sm:$0xff]  ;;  %v694_v5 = vld [vmem:[%s493_s30 + $0x8] sm:$0xff]  ;;  %v695_v8 = vld [vmem:[%s493_s30 + $0x10] sm:$0xff]  ;;  %653 = vperm.xlu0 %1989, %v649_v11   ;;  %v3104_v45 = vmov 8   ;;  %v3101_v51 = vmov 15   ;;  %v3105_v52 = vmov 11  }
  0x15   : > { %1920 = vmatmul.msk.f32.vlgmr.msra.gmra.mxu3 %vm528_vm1, %v693_v3  ;;  %v507_v13 = vld [vmem:[%s3083_s0] sm:$0xff]  ;;  %v696_v14 = vld [vmem:[%s493_s30 + $0x18] sm:$0xff]  ;;  %v512_v30 = vld [vmem:[%s3083_s0 + $0x28] sm:$0xff]  ;;  %v3100_v57 = vmov 12   ;;  %s2181_s22 = smov 120   ;;  %s1896_s23 = sshll.u32 %s3153_s21, 2 }
  0x16   : > { %1900 = vmatmul.msk.f32.vlgmr.msra.gmra.mxu0 %vm528_vm1, %v507_v13  ;;  %v519_v15 = vld [vmem:[%s3083_s0 + $0x60] sm:$0xff]  ;;  %v513_v34 = vld [vmem:[%s3083_s0 + $0x30] sm:$0xff]  ;;  %v514_v38 = vld [vmem:[%s3083_s0 + $0x38] sm:$0xff]  ;;  %s791_s30 = sld [smem:[#allocation3]]  ;;  %s2532_s28 = scalar_lea.vmem %s3094_s11, %s1896_s23 }
  0x17   : > { %v511_v26 = vld [vmem:[%s3083_s0 + $0x20] sm:$0xff]  ;;  %s1924_s24 = sld [smem:[#allocation3 + $0x1]] }
  0x18   : > { %v2369_v27 = vld [vmem:[%s3091_s8] ss:$0 sm:$0xff]  ;;  %s1925_s15 = sld [smem:[#allocation3 + $0x2]] }
  0x19   : > { %v2416_v46 = vld [vmem:[%s3089_s6] ss:$0 sm:$0xff]  ;;  %s1926_s16 = sld [smem:[#allocation3 + $0x3]] }
  0x1a   : > { %1909 = vmatmul.msk.f32.gmra.mxu2 %vm528_vm1, %v516_v4  ;;  %s1927_s17 = sld [smem:[#allocation3 + $0x4]] }
  0x1b   : > { %1918 = vmatmul.msk.f32.gmra.mxu1 %vm528_vm1, %v647_v16  ;;  %s1928_s18 = sld [smem:[#allocation3 + $0x5]] }
  0x1c   : > { %658 = vperm.xlu0 %1989, %v650_v17   ;;  %s1931_s19 = sld [smem:[#allocation3 + $0x80]] }
  0x1d   : > { %1921 = vmatmul.msk.f32.gmra.mxu3 %vm528_vm1, %v694_v5  ;;  %s1932_s20 = sld [smem:[#allocation3 + $0x81]] }
  0x1e   : > { %1901 = vmatmul.msk.f32.gmra.mxu0 %vm528_vm1, %v508_v23  ;;  %s1933_s23 = sld [smem:[#allocation3 + $0x82]] }
  0x1f   : > { %s2704_s25 = sld [smem:[#allocation3 + $0x85]] }
  0x20   : > { %s2719_s27 = sld [smem:[#allocation3 + $0x86]] }
  0x22   : > { %1910 = vmatmul.msk.f32.gmra.mxu2 %vm528_vm1, %v517_v6  ;;  %v2653_v50 = vstv %s1931_s19 }
  0x23   : > { %3126 = vst [vmem:[#allocation12_spill] sm:$0xff] %v2653_v50 }
  0x24   : > { %1991 = vset.pattern.permute.xlu0 %v2169_v22 }
  0x25   : > { %1922 = vmatmul.msk.f32.gmra.mxu3 %vm528_vm1, %v695_v8 }
  0x26   : > { %1902 = vmatmul.msk.f32.gmra.mxu0 %vm528_vm1, %v509_v24 }
  0x2a   : > { %1911 = vmatmul.msk.f32.gmra.mxu2 %vm528_vm1, %v518_v9 }
  0x2d   : > { %1923 = vmatmul.msk.f32.gmra.mxu3 %vm528_vm1, %v696_v14 }
  0x2e   : > { %1903 = vmatmul.msk.f32.gmra.mxu0 %vm528_vm1, %v510_v25 }
  0x32   : > { %1912 = vmatmul.msk.f32.gmra.mxu2 %vm528_vm1, %v519_v15 }
  0x36   : > { %1904 = vmatmul.msk.f32.gmra.mxu0 %vm528_vm1, %v511_v26 }
  0x3a   : > { %1913 = vmatmul.msk.f32.gmra.mxu2 %vm528_vm1, %v520_v18 }
  0x3e   : > { %1905 = vmatmul.msk.f32.gmra.mxu0 %vm528_vm1, %v512_v30  ;;  %v2538_v30 = vld [vmem:[%s2532_s28] sm:$0xff]  }
  0x42   : > { %1914 = vmatmul.msk.f32.gmra.mxu2 %vm528_vm1, %v521_v19 }
  0x46   : > { %1906 = vmatmul.msk.f32.gmra.mxu0 %vm528_vm1, %v513_v34 }
  0x4a   : > { %1915 = vmatmul.msk.f32.gmra.mxu2 %vm528_vm1, %v522_v20 }
  0x4e   : > { %1907 = vmatmul.msk.f32.gmra.mxu0 %vm528_vm1, %v514_v38  ;;  %v2543_v38 = vstv %s791_s30  ;;  %s1934_s30 = sld [smem:[#allocation3 + $0x83]] }
  0x86   : > { %v654_v59 = vpop.permute.xlu0 %653 }
  0x8e   : > { %v2515_v18 = vpop.permute.xlu0 %658 }
  0x90   : > { %v687_v60 = vpop.f32.mrf.mxu1 }
  0x91   : > { %v2446_v61 = vadd.f32 %v687_v60, %v654_v59 }
  0x93   : > { %3120 = vst [vmem:[#allocation6_spill] sm:$0xff] %v2446_v61  ;;  %v2489_v7 = vperm.slane %v2446_v61, 2  ;;  %v2494_v11 = vpop.f32.mrf.mxu0  ;;  %v2502_v13 = vperm.slane %v2446_v61, 4  ;;  %v2522_v23 = vperm.slane %v2446_v61, 1  ;;  %v2527_v24 = vperm.slane %v2446_v61, 0 }
  0x94   : > { %v2556_v59 = vperm.slane %v2446_v61, 3 }
  0x95   : > { %v2382_v31 = vpop.f32.mrf.mxu2 }
  0x96   : > { %v2477_v6 = vadd.f32 %v2416_v46, %v2382_v31  ;;  %3121 = vst [vmem:[#allocation7_spill] sm:$0xff] %v2556_v59 }
  0x98   : > { %v734_v28 = vpop.f32.mrf.mxu3 }
  0x99   : > { %v2373_v29 = vadd.f32 %v2369_v27, %v734_v28 }
  0x9b   : > { %845 = vperm.xlu2 %1992, %v2373_v29   ;;  %802 = vperm.xlu0 %1991, %v2373_v29   ;;  %v2505_v16 = vpop.f32.mrf.mxu0 }
  0x9c   : > { %756 = vperm.xlu1 %1990, %v2373_v29  }
  0x9d   : > { %v2394_v36 = vpop.f32.mrf.mxu2 }
  0x9e   : > { %v2471_v5 = vadd.f32 %v2416_v46, %v2394_v36  ;;  %v3099_v36 = vmov 7  }
  0xa0   : > { %v737_v42 = vpop.f32.mrf.mxu3 }
  0xa1   : > { %v2407_v43 = vadd.f32 %v2369_v27, %v737_v42  ;;  %v1943_v42 = vunpack.c.l.bf16 %v2538_v30 }
  0xa3   : > { %1994 = vset.pattern.permute.xlu2 %v2170_v32  ;;  %1998 = vset.pattern.permute.xlu0 %v3107_v33  ;;  %v604_v19 = vpop.f32.mrf.mxu0 }
  0xa4   : > { %1993 = vset.pattern.permute.xlu1 %v3106_v35  ;;  %931 = vperm.xlu2 %1994, %v2373_v29   ;;  %v2559_v60 = vadd.f32 %v2416_v46, %v604_v19 }
  0xa5   : > { %1259 = vperm.xlu0 %1998, %v2373_v29   ;;  %888 = vperm.xlu1 %1993, %v2373_v29   ;;  %v628_v41 = vpop.f32.mrf.mxu2 }
  0xa6   : > { %v2421_v48 = vadd.f32 %v2416_v46, %v628_v41  ;;  %3122 = vst [vmem:[#allocation8_spill] sm:$0xff] %v2559_v60 }
  0xa8   : > { %v740_v54 = vpop.f32.mrf.mxu3 }
  0xa9   : > { %v2435_v55 = vadd.f32 %v2369_v27, %v740_v54 }
  0xab   : > { %v607_v28 = vpop.f32.mrf.mxu0 }
  0xac   : > { %1997 = vset.pattern.permute.xlu2 %v2173_v37 }
  0xad   : > { %2001 = vset.pattern.permute.xlu0 %v3103_v39  ;;  %1995 = vset.pattern.permute.xlu1 %v3098_v40  ;;  %v631_v47 = vpop.f32.mrf.mxu2 }
  0xae   : > { %1216 = vperm.xlu2 %1997, %v2373_v29   ;;  %1388 = vperm.xlu0 %2001, %v2373_v29   ;;  %v2424_v49 = vadd.f32 %v2416_v46, %v631_v47 }
  0xaf   : > { %974 = vperm.xlu1 %1995, %v2373_v29  }
  0xb0   : > { %v743_v62 = vpop.f32.mrf.mxu3 }
  0xb1   : > { %v2452_v63 = vadd.f32 %v2369_v27, %v743_v62  ;;  %v2562_v62 = vadd.f32 %v2416_v46, %v607_v28  ;;  %v690_v28 = vpop.f32.mrf.mxu1 }
  0xb3   : > { %3123 = vst [vmem:[#allocation9_spill] sm:$0xff] %v2562_v62 }
  0xb5   : > { %v634_v53 = vpop.f32.mrf.mxu2 }
  0xb6   : > { %2002 = vset.pattern.permute.xlu2 %v3102_v44  ;;  %2006 = vset.pattern.permute.xlu0 %v2168_v21  ;;  %v635_v4 = vadd.f32 %v2416_v46, %v634_v53  ;;  %v2550_v53 = vstv %s1924_s24  ;;  %s2699_s24 = sld [smem:[#allocation3 + $0x84]] }
  0xb7   : > { %1996 = vset.pattern.permute.xlu1 %v3104_v45  ;;  %1431 = vperm.xlu2 %2002, %v2373_v29  }
  0xb8   : > { %849 = vperm.xlu0 %2006, %v2407_v43   ;;  %1173 = vperm.xlu1 %1996, %v2373_v29  }
  0xbd   : > { %v637_v56 = vpop.f32.mrf.mxu2 }
  0xbe   : > { %v638_v3 = vadd.f32 %v2416_v46, %v637_v56 }
  0xbf   : > { %2003 = vset.pattern.permute.xlu2 %v3101_v51 }
  0xc0   : > { %2016 = vset.pattern.permute.xlu0 %v3102_v44  ;;  %1999 = vset.pattern.permute.xlu1 %v3105_v52  ;;  %v2058_v8 = vpack.i.bf16 %v635_v4, %v638_v3 }
  0xc1   : > { %1474 = vperm.xlu2 %2003, %v2373_v29   ;;  %1435 = vperm.xlu0 %2016, %v2407_v43  }
  0xc2   : > { %1302 = vperm.xlu1 %1999, %v2373_v29  }
  0xc5   : > { %v640_v58 = vpop.f32.mrf.mxu2 }
  0xc6   : > { %v641_v2 = vadd.f32 %v2416_v46, %v640_v58 }
  0xc9   : > { %2007 = vset.pattern.permute.xlu2 %v3106_v35  ;;  %2021 = vset.pattern.permute.xlu0 %v3106_v35 }
  0xca   : > { %2000 = vset.pattern.permute.xlu1 %v3100_v57  ;;  %892 = vperm.xlu2 %2007, %v2407_v43  }
  0xcb   : > { %896 = vperm.xlu0 %2021, %v2435_v55   ;;  %1345 = vperm.xlu1 %2000, %v2373_v29  }
  0xcd   : > { %v643_v0 = vpop.f32.mrf.mxu2 }
  0xce   : > { %v644_v1 = vadd.f32 %v2416_v46, %v643_v0  ;;  %v2564_v0 = vstv %s1925_s15  ;;  %s2729_s15 = sld [smem:[#allocation3 + $0x87]] }
  0xd0   : > { %1130 = vmatpush.msrb.mxu3 %v644_v1  ;;  %v2069_v14 = vpack.i.bf16 %v641_v2, %v644_v1 }
  0xd2   : > { %2009 = vset.pattern.permute.xlu2 %v3098_v40  ;;  %1131 = vmatpush.msrb.mxu3 %v641_v2 }
  0xd3   : > { %2023 = vset.pattern.permute.xlu0 %v3104_v45  ;;  %2004 = vset.pattern.permute.xlu1 %v2167_v12 }
  0xd4   : > { %978 = vperm.xlu2 %2009, %v2407_v43   ;;  %1181 = vperm.xlu0 %2023, %v2435_v55  }
  0xd5   : > { %761 = vperm.xlu1 %2004, %v2407_v43   ;;  %1132 = vmatpush.msrb.mxu3 %v638_v3 }
  0xd7   : > { %1133 = vmatpush.msrb.mxu3 %v635_v4  ;;  %v610_v4 = vpop.f32.mrf.mxu0 }
  0xd9   : > { %1134 = vmatpush.msrb.mxu3 %v2424_v49 }
  0xdb   : > { %1135 = vmatpush.msrb.mxu3 %v2421_v48 }
  0xdc   : > { %2010 = vset.pattern.permute.xlu2 %v3104_v45  ;;  %2034 = vset.pattern.permute.xlu0 %v2170_v32 }
  0xdd   : > { %2005 = vset.pattern.permute.xlu1 %v2169_v22  ;;  %1177 = vperm.xlu2 %2010, %v2407_v43  }
  0xde   : > { %943 = vperm.xlu0 %2034, %v2452_v63   ;;  %806 = vperm.xlu1 %2005, %v2407_v43  }
  0xdf   : > { %1136 = vmatpush.msrb.mxu3 %v2471_v5 }
  0xe1   : > { %1137 = vmatpush.msrb.mxu3 %v2477_v6 }
  0xe5   : > { %2011 = vset.pattern.permute.xlu2 %v2173_v37 }
  0xe6   : > { %2036 = vset.pattern.permute.xlu0 %v2173_v37  ;;  %2008 = vset.pattern.permute.xlu1 %v2170_v32 }
  0xe7   : > { %1220 = vperm.xlu2 %2011, %v2407_v43   ;;  %1228 = vperm.xlu0 %2036, %v2452_v63  }
  0xe8   : > { %935 = vperm.xlu1 %2008, %v2407_v43  }
  0xef   : > { %2017 = vset.pattern.permute.xlu2 %v3101_v51  ;;  %2037 = vset.pattern.permute.xlu0 %v3101_v51 }
  0xf0   : > { %2012 = vset.pattern.permute.xlu1 %v3107_v33  ;;  %1478 = vperm.xlu2 %2017, %v2407_v43  }
  0xf1   : > { %1482 = vperm.xlu0 %2037, %v2435_v55   ;;  %1263 = vperm.xlu1 %2012, %v2407_v43  }
  0xf5   : > { %v846_v9 = vpop.permute.xlu2 %845 }
  0xf6   : > { %v2492_v10 = vadd.f32 %v2489_v7, %v846_v9 }
  0xf8   : > { %2018 = vset.pattern.permute.xlu2 %v2167_v12  ;;  %v869_v34 = vmul.f32 0.2, %v2492_v10  ;;  %vm865_vm4 = vcmp.gt.f32.partialorder %v2492_v10, 0.0 }
  0xf9   : > { %2059 = vrot.lane.b32.xlu0 %v2058_v8, %s2181_s22  ;;  %2013 = vset.pattern.permute.xlu1 %v3105_v52 }
  0xfa   : > { %766 = vperm.xlu2 %2018, %v2435_v55   ;;  %1306 = vperm.xlu1 %2013, %v2407_v43   ;;  %v873_v1 = vsel %vm865_vm4, %v2492_v10, %v869_v34 }
  0xfb   : > { %2079 = vset.pattern.permute.xlu0 %v3098_v40  ;;  %v879_v9 = vmul.f32 %v2564_v0, %v873_v1  ;;  %v2597_v1 = vadd.f32 %v690_v28, %v2515_v18  ;;  %v2623_v28 = vstv %s1928_s18 }
  0xfe   : > { %v932_v15 = vpop.permute.xlu2 %931 }
  0xff   : > { %v2508_v17 = vadd.f32 %v2502_v13, %v932_v15 }
 0x101   : > { %2070 = vrot.lane.b32.xlu0 %v2069_v14, %s2181_s22  ;;  %v955_v19 = vmul.f32 0.2, %v2508_v17  ;;  %vm951_vm5 = vcmp.gt.f32.partialorder %v2508_v17, 0.0 }
 0x102   : > { %2019 = vset.pattern.permute.xlu2 %v2169_v22  ;;  %2014 = vset.pattern.permute.xlu1 %v3100_v57 }
 0x103   : > { %810 = vperm.xlu2 %2019, %v2435_v55   ;;  %1349 = vperm.xlu1 %2014, %v2407_v43   ;;  %v959_v34 = vsel %vm951_vm5, %v2508_v17, %v955_v19  ;;  %v2600_v17 = vadd.f32 %v2416_v46, %v610_v4 }
 0x108   : > { %v2517_v20 = vpop.permute.xlu2 %1216 }
 0x109   : > { %986 = vperm.xlu0 %2079, %v2452_v63  }
 0x10b   : > { %2022 = vset.pattern.permute.xlu2 %v2170_v32  ;;  %2015 = vset.pattern.permute.xlu1 %v3103_v39 }
 0x10c   : > { %939 = vperm.xlu2 %2022, %v2435_v55   ;;  %1392 = vperm.xlu1 %2015, %v2407_v43  }
 0x10d   : > { %v803_v25 = vpop.permute.xlu0 %802 }
 0x10e   : > { %v818_v26 = vadd.f32 %v2522_v23, %v803_v25  ;;  %v757_v27 = vpop.permute.xlu1 %756 }
 0x10f   : > { %v775_v31 = vadd.f32 %v2527_v24, %v757_v27 }
 0x110   : > { %vm822_vm2 = vcmp.gt.f32.partialorder %v818_v26, 0.0  ;;  %v826_v32 = vmul.f32 0.2, %v818_v26 }
 0x111   : > { %2080 = vset.pattern.permute.xlu0 %v3099_v36  ;;  %vm779_vm3 = vcmp.gt.f32.partialorder %v775_v31, 0.0  ;;  %v783_v41 = vmul.f32 0.2, %v775_v31  ;;  %v2548_v47 = vpop.permute.xlu2 %1431 }
 0x112   : > { %1064 = vperm.xlu0 %2080, %v2407_v43   ;;  %v830_v54 = vsel %vm822_vm2, %v818_v26, %v826_v32  ;;  %v2581_v26 = vstv %s1926_s16  ;;  %v2585_v32 = vstv %s1927_s17  ;;  %s2184_s16 = smov 8  }
 0x113   : > { %v787_v56 = vsel %vm779_vm3, %v775_v31, %v783_v41 }
 0x114   : > { %v793_v58 = vmul.f32 %v2543_v38, %v787_v56  ;;  %2024 = vset.pattern.permute.xlu2 %v2173_v37  ;;  %2020 = vset.pattern.permute.xlu1 %v2168_v21  ;;  %v836_v37 = vmul.f32 %v2550_v53, %v830_v54  ;;  %v2594_v56 = vperm.slane %v2446_v61, 5 }
 0x115   : > { %1224 = vperm.xlu2 %2024, %v2435_v55   ;;  %853 = vperm.xlu1 %2020, %v2435_v55  }
 0x116   : > { %v797_v2 = vadd.f32 %v1943_v42, %v793_v58  ;;  %3124 = vst [vmem:[#allocation10_spill] sm:$0xff] %v2594_v56  ;;  %v613_v58 = vpop.f32.mrf.mxu0 }
 0x117   : > { %v889_v8 = vpop.permute.xlu1 %888  ;;  %v2575_v15 = vpop.permute.xlu0 %1259 }
 0x118   : > { %v840_v14 = vadd.f32 %v836_v37, %v797_v2  ;;  %v904_v10 = vadd.f32 %v2556_v59, %v889_v8  ;;  %v2603_v37 = vadd.f32 %v2416_v46, %v613_v58  ;;  %v965_v2 = vmul.f32 %v2585_v32, %v959_v34 }
 0x11a   : > { %1068 = vperm.xlu0 %2080, %v2435_v55   ;;  %v883_v25 = vadd.f32 %v879_v9, %v840_v14  ;;  %vm908_vm6 = vcmp.gt.f32.partialorder %v904_v10, 0.0  ;;  %v912_v27 = vmul.f32 0.2, %v904_v10 }
 0x11b   : > { %v2583_v31 = vpop.permute.xlu2 %1474 }
 0x11c   : > { %v916_v41 = vsel %vm908_vm6, %v904_v10, %v912_v27  ;;  %v2610_v10 = vadd.f32 %v2416_v46, %v2494_v11  ;;  %v2617_v27 = vperm.slane %v2597_v1, 1 }
 0x11d   : > { %2025 = vset.pattern.permute.xlu2 %v3107_v33  ;;  %2026 = vset.pattern.permute.xlu1 %v3105_v52  ;;  %v922_v54 = vmul.f32 %v2581_v26, %v916_v41  ;;  %v3111_v52 = vunpack.c.h.bf16 %v2538_v30 }
 0x11e   : > { %1267 = vperm.xlu2 %2025, %v2435_v55   ;;  %1310 = vperm.xlu1 %2026, %v2435_v55  }
 0x11f   : > { %v926_v8 = vadd.f32 %v922_v54, %v883_v25  ;;  %v2621_v25 = vadd.f32 %v2416_v46, %v2505_v16  ;;  %v1232_v16 = vadd.f32 %v2617_v27, %v2517_v20 }
 0x120   : > { %v2613_v18 = vpop.permute.xlu0 %1388 }
 0x121   : > { %v975_v9 = vpop.permute.xlu1 %974  ;;  %v969_v19 = vadd.f32 %v965_v2, %v926_v8  ;;  %v2086_v54 = vpack.i.bf16 %v2610_v10, %v2621_v25  ;;  %v616_v2 = vpop.f32.mrf.mxu0  ;;  %v1240_v14 = vmul.f32 0.2, %v1232_v16  ;;  %vm1236_vm8 = vcmp.gt.f32.partialorder %v1232_v16, 0.0 }
 0x122   : > { %1072 = vperm.xlu0 %2080, %v2452_v63   ;;  %v990_v4 = vadd.f32 %v2594_v56, %v975_v9  ;;  %v2638_v9 = vperm.slane %v2597_v1, 0 }
 0x124   : > { %vm994_vm7 = vcmp.gt.f32.partialorder %v990_v4, 0.0  ;;  %v998_v34 = vmul.f32 0.2, %v990_v4  ;;  %v893_v11 = vpop.permute.xlu2 %892 }
 0x125   : > { %v2626_v41 = vadd.f32 %v2556_v59, %v893_v11 }
 0x126   : > { %v1002_v58 = vsel %vm994_vm7, %v990_v4, %v998_v34  ;;  %2027 = vset.pattern.permute.xlu2 %v3100_v57  ;;  %2028 = vset.pattern.permute.xlu1 %v3103_v39  ;;  %v2641_v4 = vperm.slane %v2597_v1, 2  ;;  %v1244_v57 = vsel %vm1236_vm8, %v1232_v16, %v1240_v14 }
 0x127   : > { %v1008_v8 = vmul.f32 %v2623_v28, %v1002_v58  ;;  %1353 = vperm.xlu2 %2027, %v2435_v55   ;;  %1396 = vperm.xlu1 %2028, %v2435_v55   ;;  %vm909_vm5 = vcmp.gt.f32.partialorder %v2626_v41, 0.0 }
 0x128   : > { %v1275_v40 = vadd.f32 %v2641_v4, %v2575_v15 }
 0x129   : > { %v2643_v34 = vadd.f32 %v1008_v8, %v969_v19  ;;  %v619_v36 = vpop.f32.mrf.mxu0 }
 0x12a   : > { %v1174_v11 = vpop.permute.xlu1 %1173  ;;  %v850_v3 = vpop.permute.xlu0 %849  ;;  %2087 = vrot.lane.b32.xlu0 %v2086_v54, %s2181_s22  ;;  %v2655_v54 = vstv %s1932_s20  ;;  %v2669_v14 = vadd.f32 %v2416_v46, %v619_v36  ;;  %v1283_v16 = vmul.f32 0.2, %v1275_v40  ;;  %vm1279_vm10 = vcmp.gt.f32.partialorder %v1275_v40, 0.0 }
 0x12b   : > { %3125 = vst [vmem:[#allocation11_spill] sm:$0xff] %v2643_v34  ;;  %v1189_v20 = vadd.f32 %v2638_v9, %v1174_v11  ;;  %v2648_v58 = vadd.f32 %v2489_v7, %v850_v3  ;;  %2091 = vset.pattern.permute.xlu0 %v3101_v51  ;;  %v2666_v51 = vadd.f32 %v2416_v46, %v616_v2  ;;  %v2683_v36 = vstv %s1933_s23 }
 0x12c   : > { %1138 = vmatpush.msrb.mxu3 %v2669_v14 }
 0x12d   : > { %vm1193_vm9 = vcmp.gt.f32.partialorder %v1189_v20, 0.0  ;;  %v1197_v19 = vmul.f32 0.2, %v1189_v20  ;;  %vm866_vm3 = vcmp.gt.f32.partialorder %v2648_v58, 0.0 }
 0x12e   : > { %v979_v8 = vpop.permute.xlu2 %978  ;;  %1139 = vmatpush.msrb.mxu3 %v2666_v51 }
 0x12f   : > { %v1201_v11 = vsel %vm1193_vm9, %v1189_v20, %v1197_v19  ;;  %2030 = vset.pattern.permute.xlu2 %v2167_v12  ;;  %2029 = vset.pattern.permute.xlu1 %v3102_v44  ;;  %v2660_v3 = vadd.f32 %v2594_v56, %v979_v8  ;;  %v2672_v12 = vperm.slane %v2597_v1, 3  ;;  %v1250_v20 = vmul.f32 %v2655_v54, %v1244_v57 }
 0x130   : > { %v1207_v15 = vmul.f32 %v2653_v50, %v1201_v11  ;;  %771 = vperm.xlu2 %2030, %v2452_v63   ;;  %1439 = vperm.xlu1 %2029, %v2435_v55   ;;  %v1287_v44 = vsel %vm1279_vm10, %v1275_v40, %v1283_v16  ;;  %v2686_v57 = vperm.slane %v2597_v1, 5  ;;  %v2702_v16 = vperm.slane %v2597_v1, 7 }
 0x131   : > { %1140 = vmatpush.msrb.mxu3 %v2603_v37  ;;  %vm995_vm7 = vcmp.gt.f32.partialorder %v2660_v3, 0.0 }
 0x132   : > { %v1211_v19 = vadd.f32 %v1943_v42, %v1207_v15  ;;  %v2690_v42 = vstv %s1934_s30 }
 0x133   : > { %v2680_v2 = vpop.permute.xlu0 %1435  ;;  %1141 = vmatpush.msrb.mxu3 %v2600_v17 }
 0x134   : > { %v1254_v11 = vadd.f32 %v1250_v20, %v1211_v19  ;;  %v1303_v46 = vpop.permute.xlu1 %1302  ;;  %v2693_v20 = vperm.slane %v2597_v1, 6  ;;  %v1293_v19 = vmul.f32 %v2683_v36, %v1287_v44 }
 0x135   : > { %v1318_v39 = vadd.f32 %v2672_v12, %v1303_v46  ;;  %v1404_v46 = vadd.f32 %v2686_v57, %v2613_v18  ;;  %1142 = vmatpush.msrb.mxu3 %v2562_v62 }
 0x136   : > { %v1447_v18 = vadd.f32 %v2693_v20, %v2548_v47 }
 0x137   : > { %vm1322_vm11 = vcmp.gt.f32.partialorder %v1318_v39, 0.0  ;;  %v1326_v15 = vmul.f32 0.2, %v1318_v39  ;;  %v1178_v8 = vpop.permute.xlu2 %1177  ;;  %v1412_v35 = vmul.f32 0.2, %v1404_v46  ;;  %1143 = vmatpush.msrb.mxu3 %v2559_v60  ;;  %vm1408_vm13 = vcmp.gt.f32.partialorder %v1404_v46, 0.0 }
 0x138   : > { %2032 = vset.pattern.permute.xlu2 %v2168_v21  ;;  %2031 = vset.pattern.permute.xlu1 %v2169_v22  ;;  %v1190_v40 = vadd.f32 %v2638_v9, %v1178_v8  ;;  %v2711_v21 = vperm.slane %v2597_v1, 4  ;;  %v1297_v22 = vadd.f32 %v1293_v19, %v1254_v11  ;;  %v1490_v19 = vadd.f32 %v2702_v16, %v2583_v31 }
 0x139   : > { %v1330_v45 = vsel %vm1322_vm11, %v1318_v39, %v1326_v15  ;;  %857 = vperm.xlu2 %2032, %v2452_v63   ;;  %814 = vperm.xlu1 %2031, %v2452_v63   ;;  %vm1451_vm15 = vcmp.gt.f32.partialorder %v1447_v18, 0.0  ;;  %v2738_v31 = vstv %s2704_s25  ;;  %v1416_v61 = vsel %vm1408_vm13, %v1404_v46, %v1412_v35 }
 0x13a   : > { %v1336_v44 = vmul.f32 %v2690_v42, %v1330_v45  ;;  %vm1194_vm12 = vcmp.gt.f32.partialorder %v1190_v40, 0.0  ;;  %v1198_v8 = vmul.f32 0.2, %v1190_v40  ;;  %1144 = vmatpush.msrb.mxu3 %v2621_v25  ;;  %v1498_v34 = vmul.f32 0.2, %v1490_v19 }
 0x13b   : > { %vm1494_vm0 = vcmp.gt.f32.partialorder %v1490_v19, 0.0  ;;  %v1422_v35 = vmul.f32 %v2738_v31, %v1416_v61 }
 0x13c   : > { %v1340_v39 = vadd.f32 %v1336_v44, %v1297_v22  ;;  %v1202_v15 = vsel %vm1194_vm12, %v1190_v40, %v1198_v8  ;;  %v1455_v22 = vmul.f32 0.2, %v1447_v18  ;;  %v2734_v44 = vstv %s2699_s24  ;;  %1145 = vmatpush.msrb.mxu3 %v2610_v10 }
 0x13d   : > { %v1208_v1 = vmul.f32 %v2653_v50, %v1202_v15  ;;  %v1346_v11 = vpop.permute.xlu1 %1345  ;;  %v897_v45 = vpop.permute.xlu0 %896  ;;  %v3127_v15 = vmov 10   ;;  %v1502_v56 = vsel %vm1494_vm0, %v1490_v19, %v1498_v34  ;;  %v3130_v34 = vmov 8  }
 0x13e   : > { %v1361_v33 = vadd.f32 %v2711_v21, %v1346_v11  ;;  %v2726_v47 = vadd.f32 %v2556_v59, %v897_v45  ;;  %v3128_v11 = vmov 3  }
 0x13f   : > { %v1212_v40 = vadd.f32 %v3111_v52, %v1208_v1  ;;  %v1459_v52 = vsel %vm1451_vm15, %v1447_v18, %v1455_v22 }
 0x140   : > { %vm1365_vm14 = vcmp.gt.f32.partialorder %v1361_v33, 0.0  ;;  %v1369_v8 = vmul.f32 0.2, %v1361_v33  ;;  %vm910_vm0 = vcmp.gt.f32.partialorder %v2726_v47, 0.0 }
 0x141   : > { %2038 = vset.pattern.permute.xlu2 %v3127_v15  ;;  %2033 = vset.pattern.permute.xlu1 %v3128_v11  ;;  %v1221_v45 = vpop.permute.xlu2 %1220  ;;  %v2748_v11 = vstv %s2719_s27  ;;  %s3060_s27 = scalar_lea.vmem %s3097_s14, %s1894_s26 }
 0x142   : > { %v1373_v59 = vsel %vm1365_vm14, %v1361_v33, %v1369_v8  ;;  %1271 = vperm.xlu2 %2038, %v2452_v63   ;;  %v1233_v1 = vadd.f32 %v2617_v27, %v1221_v45  ;;  %900 = vperm.xlu1 %2033, %v2452_v63   ;;  %v2754_v45 = vstv %s2729_s15  ;;  %v1465_v10 = vmul.f32 %v2748_v11, %v1459_v52 }
 0x143   : > { %v1379_v25 = vmul.f32 %v2734_v44, %v1373_v59  ;;  %v1508_v61 = vmul.f32 %v2754_v45, %v1502_v56 }
 0x144   : > { %vm1237_vm1 = vcmp.gt.f32.partialorder %v1233_v1, 0.0  ;;  %v1241_v15 = vmul.f32 0.2, %v1233_v1 }
 0x145   : > { %v1383_v33 = vadd.f32 %v1379_v25, %v1340_v39 }
 0x146   : > { %v1245_v46 = vsel %vm1237_vm1, %v1233_v1, %v1241_v15  ;;  %v2751_v8 = vpop.permute.xlu0 %1181  ;;  %v3129_v1 = vmov 11  }
 0x147   : > { %v1251_v50 = vmul.f32 %v2655_v54, %v1245_v46  ;;  %v762_v62 = vpop.permute.xlu1 %761  ;;  %v1426_v59 = vadd.f32 %v1422_v35, %v1383_v33  ;;  %v870_v35 = vmul.f32 0.2, %v2648_v58 }
 0x148   : > { %v776_v18 = vadd.f32 %v2527_v24, %v762_v62  ;;  %v3131_v62 = vunpack.c.h.bf16 %v2538_v30  ;;  %v3134_v30 = vmov 12  }
 0x149   : > { %v2759_v22 = vadd.f32 %v1251_v50, %v1212_v40  ;;  %v1469_v60 = vadd.f32 %v1465_v10, %v1426_v59  ;;  %v3133_v10 = vmov 13  }
 0x14a   : > { %vm780_vm2 = vcmp.gt.f32.partialorder %v776_v18, 0.0  ;;  %v784_v39 = vmul.f32 0.2, %v776_v18  ;;  %2039 = vset.pattern.permute.xlu2 %v3129_v1  ;;  %2035 = vset.pattern.permute.xlu1 %v3130_v34  ;;  %v2768_v25 = vpop.permute.xlu2 %1478 }
 0x14b   : > { %1314 = vperm.xlu2 %2039, %v2452_v63   ;;  %1185 = vperm.xlu1 %2035, %v2452_v63   ;;  %v2766_v19 = vadd.f32 %v1508_v61, %v1469_v60  ;;  %v913_v60 = vmul.f32 0.2, %v2626_v41  ;;  %v874_v61 = vsel %vm866_vm3, %v2648_v58, %v870_v35 }
 0x14c   : > { %v788_v52 = vsel %vm780_vm2, %v776_v18, %v784_v39  ;;  %v2787_v39 = vld [vmem:[%s2532_s28 + $0x8] sm:$0xff]   ;;  %s1930_s28 = sld [smem:[#allocation3 + $0x7]] }
 0x14d   : > { %v794_v50 = vmul.f32 %v2543_v38, %v788_v52 }
 0x14f   : > { %v798_v56 = vadd.f32 %v3131_v62, %v794_v50  ;;  %v917_v50 = vsel %vm909_vm5, %v2626_v41, %v913_v60  ;;  %v3135_v60 = vmov 15  }
 0x150   : > { %v807_v40 = vpop.permute.xlu1 %806  ;;  %v944_v15 = vpop.permute.xlu0 %943 }
 0x151   : > { %v819_v33 = vadd.f32 %v2522_v23, %v807_v40  ;;  %v2776_v46 = vadd.f32 %v2502_v13, %v944_v15  ;;  %v880_v40 = vmul.f32 %v2564_v0, %v874_v61  ;;  %v3119_v15 = vunpack.c.l.bf16 %v2787_v39 }
 0x152   : > { %v3136_v61 = vmov 14  }
 0x153   : > { %3132 = vst [vmem:[#allocation13_spill] sm:$0xff] %v2776_v46  ;;  %vm823_vm4 = vcmp.gt.f32.partialorder %v819_v33, 0.0  ;;  %v827_v59 = vmul.f32 0.2, %v819_v33  ;;  %2041 = vset.pattern.permute.xlu2 %v3133_v10  ;;  %2040 = vset.pattern.permute.xlu1 %v3134_v30  ;;  %v923_v46 = vmul.f32 %v2581_v26, %v917_v50 }
 0x154   : > { %1400 = vperm.xlu2 %2041, %v2452_v63   ;;  %1357 = vperm.xlu1 %2040, %v2452_v63   ;;  %v767_v18 = vpop.permute.xlu2 %766 }
 0x155   : > { %v831_v1 = vsel %vm823_vm4, %v819_v33, %v827_v59  ;;  %v777_v34 = vadd.f32 %v2527_v24, %v767_v18  ;;  %v999_v59 = vmul.f32 0.2, %v2660_v3 }
 0x156   : > { %v837_v52 = vmul.f32 %v2550_v53, %v831_v1 }
 0x157   : > { %vm781_vm6 = vcmp.gt.f32.partialorder %v777_v34, 0.0  ;;  %v785_v62 = vmul.f32 0.2, %v777_v34  ;;  %v1003_v50 = vsel %vm995_vm7, %v2660_v3, %v999_v59  ;;  %v2183_v3 = vmov 6  }
 0x158   : > { %v841_v10 = vadd.f32 %v837_v52, %v798_v56 }
 0x159   : > { %v789_v30 = vsel %vm781_vm6, %v777_v34, %v785_v62 }
 0x15a   : > { %v884_v58 = vadd.f32 %v880_v40, %v841_v10  ;;  %v795_v35 = vmul.f32 %v2543_v38, %v789_v30  ;;  %v936_v33 = vpop.permute.xlu1 %935  ;;  %v1009_v30 = vmul.f32 %v2623_v28, %v1003_v50 }
 0x15b   : > { %v948_v18 = vadd.f32 %v2502_v13, %v936_v33 }
 0x15c   : > { %v799_v41 = vadd.f32 %v3119_v15, %v795_v35  ;;  %2043 = vset.pattern.permute.xlu2 %v3135_v60  ;;  %2042 = vset.pattern.permute.xlu1 %v3136_v61  ;;  %v927_v56 = vadd.f32 %v923_v46, %v884_v58 }
 0x15d   : > { %vm952_vm8 = vcmp.gt.f32.partialorder %v948_v18, 0.0  ;;  %v956_v1 = vmul.f32 0.2, %v948_v18  ;;  %1486 = vperm.xlu2 %2043, %v2452_v63   ;;  %v811_v34 = vpop.permute.xlu2 %810  ;;  %1443 = vperm.xlu1 %2042, %v2452_v63  }
 0x15e   : > { %v820_v52 = vadd.f32 %v2522_v23, %v811_v34  ;;  %v3137_v34 = vmov 7  }
 0x15f   : > { %v960_v62 = vsel %vm952_vm8, %v948_v18, %v956_v1 }
 0x160   : > { %v966_v40 = vmul.f32 %v2585_v32, %v960_v62  ;;  %vm824_vm9 = vcmp.gt.f32.partialorder %v820_v52, 0.0  ;;  %v828_v10 = vmul.f32 0.2, %v820_v52  ;;  %v3138_v62 = vpack.i.bf16 %v2421_v48, %v2424_v49 }
 0x161   : > { %v1448_v49 = vadd.f32 %v2693_v20, %v2680_v2 }
 0x162   : > { %v832_v35 = vsel %vm824_vm9, %v820_v52, %v828_v10  ;;  %v970_v46 = vadd.f32 %v966_v40, %v927_v56 }
 0x163   : > { %v838_v58 = vmul.f32 %v2550_v53, %v832_v35  ;;  %v1264_v33 = vpop.permute.xlu1 %1263  ;;  %v3139_v35 = vmov 5   ;;  %vm1452_vm13 = vcmp.gt.f32.partialorder %v1448_v49, 0.0 }
 0x164   : > { %v1276_v60 = vadd.f32 %v2641_v4, %v1264_v33  ;;  %v2811_v61 = vadd.f32 %v1009_v30, %v970_v46  ;;  %v3140_v33 = vpack.i.bf16 %v2666_v51, %v2669_v14 }
 0x165   : > { %v2813_v15 = vadd.f32 %v838_v58, %v799_v41  ;;  %2045 = vset.pattern.permute.xlu2 %v3137_v34  ;;  %2044 = vset.pattern.permute.xlu1 %v2183_v3  ;;  %v1456_v34 = vmul.f32 0.2, %v1448_v49 }
 0x166   : > { %vm1280_vm10 = vcmp.gt.f32.partialorder %v1276_v60, 0.0  ;;  %v1284_v59 = vmul.f32 0.2, %v1276_v60  ;;  %1060 = vperm.xlu2 %2045, %v2373_v29   ;;  %v940_v18 = vpop.permute.xlu2 %939  ;;  %1017 = vperm.xlu1 %2044, %v2373_v29  }
 0x167   : > { %v2819_v56 = vadd.f32 %v2502_v13, %v940_v18  ;;  %v2052_v13 = vpack.i.bf16 %v2477_v6, %v2471_v5  ;;  %v1491_v5 = vadd.f32 %v2702_v16, %v2768_v25 }
 0x168   : > { %v1288_v1 = vsel %vm1280_vm10, %v1276_v60, %v1284_v59 }
 0x169   : > { %v1294_v52 = vmul.f32 %v2683_v36, %v1288_v1  ;;  %v1499_v2 = vmul.f32 0.2, %v1491_v5  ;;  %vm1495_vm15 = vcmp.gt.f32.partialorder %v1491_v5, 0.0  ;;  %vm953_vm2 = vcmp.gt.f32.partialorder %v2819_v56, 0.0 }
 0x16b   : > { %v1298_v41 = vadd.f32 %v1294_v52, %v2759_v22 }
 0x16c   : > { %v1307_v50 = vpop.permute.xlu1 %1306 }
 0x16d   : > { %v1319_v29 = vadd.f32 %v2672_v12, %v1307_v50  ;;  %v1460_v50 = vsel %vm1452_vm13, %v1448_v49, %v1456_v34  ;;  %v957_v49 = vmul.f32 0.2, %v2819_v56  ;;  %v1191_v34 = vadd.f32 %v2638_v9, %v2751_v8 }
 0x16e   : > { %2051 = vset.pattern.permute.xlu2 %v2183_v3  ;;  %2047 = vrot.lane.b32.xlu1 %v3138_v62, %s2181_s22 }
 0x16f   : > { %1021 = vperm.xlu2 %2051, %v2407_v43   ;;  %v2828_v40 = vpop.permute.xlu2 %1224  ;;  %v1327_v22 = vmul.f32 0.2, %v1319_v29  ;;  %vm1323_vm11 = vcmp.gt.f32.partialorder %v1319_v29, 0.0  ;;  %v1199_v8 = vmul.f32 0.2, %v1191_v34  ;;  %vm1195_vm4 = vcmp.gt.f32.partialorder %v1191_v34, 0.0 }
 0x171   : > { %v1331_v46 = vsel %vm1323_vm11, %v1319_v29, %v1327_v22  ;;  %v1503_v29 = vsel %vm1495_vm15, %v1491_v5, %v1499_v2  ;;  %v2852_v22 = vpop.permute.xlu0 %1228 }
 0x172   : > { %v1337_v58 = vmul.f32 %v2690_v42, %v1331_v46 }
 0x174   : > { %v1341_v52 = vadd.f32 %v1337_v58, %v1298_v41  ;;  %v3141_v41 = vpack.i.bf16 %v2600_v17, %v2603_v37 }
 0x175   : > { %v1350_v10 = vpop.permute.xlu1 %1349 }
 0x176   : > { %v1362_v30 = vadd.f32 %v2711_v21, %v1350_v10  ;;  %2053 = vrot.lane.b32.xlu1 %v2052_v13, %s2181_s22  ;;  %v1466_v10 = vmul.f32 %v2748_v11, %v1460_v50 }
 0x177   : > { %2057 = vset.pattern.permute.xlu2 %v3139_v35 }
 0x178   : > { %982 = vperm.xlu2 %2057, %v2435_v55   ;;  %v1268_v48 = vpop.permute.xlu2 %1267  ;;  %v1370_v43 = vmul.f32 0.2, %v1362_v30  ;;  %vm1366_vm12 = vcmp.gt.f32.partialorder %v1362_v30, 0.0 }
 0x17a   : > { %v1374_v6 = vsel %vm1366_vm12, %v1362_v30, %v1370_v43  ;;  %v1509_v43 = vmul.f32 %v2754_v45, %v1503_v29 }
 0x17b   : > { %v1380_v18 = vmul.f32 %v2734_v44, %v1374_v6 }
 0x17d   : > { %v1384_v14 = vadd.f32 %v1380_v18, %v1341_v52  ;;  %v1948_v18 = vunpack.c.h.bf16 %v2787_v39 }
 0x17e   : > { %2064 = vrot.lane.b32.xlu1 %v3140_v33, %s2181_s22  ;;  %v1393_v60 = vpop.permute.xlu1 %1392 }
 0x17f   : > { %v1405_v59 = vadd.f32 %v2686_v57, %v1393_v60 }
 0x180   : > { %2068 = vset.pattern.permute.xlu2 %v2183_v3  ;;  %v914_v3 = vmul.f32 0.2, %v2726_v47 }
 0x181   : > { %vm1409_vm14 = vcmp.gt.f32.partialorder %v1405_v59, 0.0  ;;  %v1413_v1 = vmul.f32 0.2, %v1405_v59  ;;  %1025 = vperm.xlu2 %2068, %v2435_v55   ;;  %v1354_v25 = vpop.permute.xlu2 %1353 }
 0x182   : > { %v918_v33 = vsel %vm910_vm0, %v2726_v47, %v914_v3 }
 0x183   : > { %v1417_v62 = vsel %vm1409_vm14, %v1405_v59, %v1413_v1  ;;  %v961_v59 = vsel %vm953_vm2, %v2819_v56, %v957_v49  ;;  %v924_v2 = vmul.f32 %v2581_v26, %v918_v33  ;;  %v1234_v1 = vadd.f32 %v2617_v27, %v2828_v40  ;;  %v3142_v56 = vld [vmem:[#allocation8_spill] sm:$0xff] }
 0x184   : > { %v1423_v51 = vmul.f32 %v2738_v31, %v1417_v62  ;;  %v967_v62 = vmul.f32 %v2585_v32, %v961_v59  ;;  %v3145_v49 = vld [vmem:[#allocation12_spill] sm:$0xff] }
 0x185   : > { %v1242_v40 = vmul.f32 0.2, %v1234_v1  ;;  %vm1238_vm5 = vcmp.gt.f32.partialorder %v1234_v1, 0.0 }
 0x186   : > { %v1427_v13 = vadd.f32 %v1423_v51, %v1384_v14  ;;  %v1277_v51 = vadd.f32 %v2641_v4, %v1268_v48  ;;  %v3143_v14 = vld [vmem:[#allocation9_spill] sm:$0xff] }
 0x187   : > { %v854_v30 = vpop.permute.xlu1 %853  ;;  %v3144_v29 = vpack.i.bf16 %v3142_v56, %v3143_v14 }
 0x188   : > { %v863_v35 = vadd.f32 %v2489_v7, %v854_v30  ;;  %v1470_v55 = vadd.f32 %v1466_v10, %v1427_v13  ;;  %v1483_v10 = vpop.permute.xlu0 %1482  ;;  %vm1281_vm6 = vcmp.gt.f32.partialorder %v1277_v51, 0.0 }
 0x189   : > { %2075 = vrot.lane.b32.xlu2 %v3141_v41, %s2181_s22 }
 0x18a   : > { %vm867_vm1 = vcmp.gt.f32.partialorder %v863_v35, 0.0  ;;  %v871_v46 = vmul.f32 0.2, %v863_v35  ;;  %v772_v5 = vpop.permute.xlu2 %771  ;;  %v2862_v6 = vadd.f32 %v1509_v43, %v1470_v55  ;;  %v1285_v55 = vmul.f32 0.2, %v1277_v51 }
 0x18b   : > { %v778_v58 = vadd.f32 %v2527_v24, %v772_v5  ;;  %v1246_v43 = vsel %vm1238_vm5, %v1234_v1, %v1242_v40 }
 0x18c   : > { %v875_v60 = vsel %vm867_vm1, %v863_v35, %v871_v46  ;;  %v1203_v35 = vsel %vm1195_vm4, %v1191_v34, %v1199_v8  ;;  %v1289_v5 = vsel %vm1281_vm6, %v1277_v51, %v1285_v55 }
 0x18d   : > { %v881_v17 = vmul.f32 %v2564_v0, %v875_v60  ;;  %vm782_vm3 = vcmp.gt.f32.partialorder %v778_v58, 0.0  ;;  %v786_v37 = vmul.f32 0.2, %v778_v58  ;;  %v1209_v46 = vmul.f32 %v3145_v49, %v1203_v35 }
 0x18e   : > { %v1252_v60 = vmul.f32 %v2655_v54, %v1246_v43 }
 0x18f   : > { %v885_v24 = vadd.f32 %v881_v17, %v2813_v15  ;;  %v790_v47 = vsel %vm782_vm3, %v778_v58, %v786_v37  ;;  %v1363_v58 = vadd.f32 %v2711_v21, %v1354_v25 }
 0x190   : > { %v796_v52 = vmul.f32 %v2543_v38, %v790_v47  ;;  %v1311_v50 = vpop.permute.xlu1 %1310  ;;  %v2898_v59 = vpop.permute.xlu0 %2059 }
 0x191   : > { %2082 = vrot.lane.b32.xlu2 %v3144_v29, %s2181_s22  ;;  %v928_v13 = vadd.f32 %v924_v2, %v885_v24  ;;  %v1320_v38 = vadd.f32 %v2672_v12, %v1311_v50  ;;  %v1295_v2 = vmul.f32 %v2683_v36, %v1289_v5  ;;  %v1371_v24 = vmul.f32 0.2, %v1363_v58  ;;  %s1929_s22 = sld [smem:[#allocation3 + $0x6]] }
 0x192   : > { %v2885_v15 = vadd.f32 %v1948_v18, %v796_v52  ;;  %vm1367_vm8 = vcmp.gt.f32.partialorder %v1363_v58, 0.0  ;;  %v1492_v50 = vadd.f32 %v2702_v16, %v1483_v10 }
 0x193   : > { %v858_v30 = vpop.permute.xlu2 %857  ;;  %v2888_v3 = vadd.f32 %v967_v62, %v928_v13  ;;  %v1328_v41 = vmul.f32 0.2, %v1320_v38  ;;  %vm1324_vm7 = vcmp.gt.f32.partialorder %v1320_v38, 0.0  ;;  %v1375_v8 = vsel %vm1367_vm8, %v1363_v58, %v1371_v24 }
 0x194   : > { %v864_v48 = vadd.f32 %v2489_v7, %v858_v30  ;;  %v3146_v7 = vunpack.c.l.bf16 %v2787_v39  ;;  %v1381_v29 = vmul.f32 %v2734_v44, %v1375_v8  ;;  %v1500_v40 = vmul.f32 0.2, %v1492_v50 }
 0x195   : > { %v1332_v37 = vsel %vm1324_vm7, %v1320_v38, %v1328_v41  ;;  %vm1496_vm11 = vcmp.gt.f32.partialorder %v1492_v50, 0.0 }
 0x196   : > { %v1213_v34 = vadd.f32 %v3146_v7, %v1209_v46  ;;  %v1504_v46 = vsel %vm1496_vm11, %v1492_v50, %v1500_v40  ;;  %vm868_vm12 = vcmp.gt.f32.partialorder %v864_v48, 0.0 }
 0x198   : > { %v1256_v25 = vadd.f32 %v1252_v60, %v1213_v34  ;;  %v2071_v35 = vpop.permute.xlu0 %2070 }
 0x199   : > { %1029 = vperm.xlu2 %2068, %v2452_v63   ;;  %v1397_v33 = vpop.permute.xlu1 %1396  ;;  %v1338_v63 = vmul.f32 %v2690_v42, %v1332_v37 }
 0x19a   : > { %v1406_v17 = vadd.f32 %v2686_v57, %v1397_v33  ;;  %v1299_v52 = vadd.f32 %v1295_v2, %v1256_v25  ;;  %v872_v33 = vmul.f32 0.2, %v864_v48 }
 0x19c   : > { %v2901_v1 = vpop.permute.xlu2 %1271  ;;  %v1414_v47 = vmul.f32 0.2, %v1406_v17  ;;  %vm1410_vm9 = vcmp.gt.f32.partialorder %v1406_v17, 0.0  ;;  %v1342_v51 = vadd.f32 %v1338_v63, %v1299_v52  ;;  %v876_v24 = vsel %vm868_vm12, %v864_v48, %v872_v33  ;;  %v3147_v63 = vld [vmem:[#allocation10_spill] sm:$0xff] }
 0x19d   : > { %v2061_v33 = vunpack.i.l.bf16 %v2898_v59 }
 0x19e   : > { %v1418_v62 = vsel %vm1410_vm9, %v1406_v17, %v1414_v47  ;;  %v1385_v55 = vadd.f32 %v1381_v29, %v1342_v51  ;;  %v1510_v17 = vmul.f32 %v2754_v45, %v1504_v46 }
 0x19f   : > { %v1424_v13 = vmul.f32 %v2738_v31, %v1418_v62  ;;  %v3148_v62 = vld [vmem:[#allocation13_spill] sm:$0xff] }
 0x1a0   : > { %v987_v2 = vpop.permute.xlu0 %986  ;;  %v958_v51 = vmul.f32 0.2, %v3148_v62  ;;  %vm954_vm14 = vcmp.gt.f32.partialorder %v3148_v62, 0.0 }
 0x1a1   : > { %v1428_v10 = vadd.f32 %v1424_v13, %v1385_v55  ;;  %v993_v52 = vadd.f32 %v3147_v63, %v987_v2 }
 0x1a2   : > { %v1440_v56 = vpop.permute.xlu1 %1439 }
 0x1a3   : > { %v1449_v14 = vadd.f32 %v2693_v20, %v1440_v56  ;;  %v1001_v48 = vmul.f32 0.2, %v993_v52  ;;  %vm997_vm0 = vcmp.gt.f32.partialorder %v993_v52, 0.0 }
 0x1a5   : > { %vm1453_vm10 = vcmp.gt.f32.partialorder %v1449_v14, 0.0  ;;  %v1457_v38 = vmul.f32 0.2, %v1449_v14  ;;  %v1315_v30 = vpop.permute.xlu2 %1314 }
 0x1a7   : > { %v1461_v43 = vsel %vm1453_vm10, %v1449_v14, %v1457_v38  ;;  %v3149_v14 = vld [vmem:[#allocation7_spill] sm:$0xff] }
 0x1a8   : > { %1516 = vmax.xlane.f32.xlu1 %v2766_v19  ;;  %v1467_v41 = vmul.f32 %v2748_v11, %v1461_v43  ;;  %v1005_v43 = vsel %vm997_vm0, %v993_v52, %v1001_v48 }
 0x1aa   : > { %v1471_v5 = vadd.f32 %v1467_v41, %v1428_v10  ;;  %v1278_v10 = vadd.f32 %v2641_v4, %v2901_v1  ;;  %v2073_v41 = vunpack.i.h.bf16 %v2071_v35  ;;  %v2062_v4 = vunpack.i.h.bf16 %v2898_v59 }
 0x1ab   : > { %v815_v58 = vpop.permute.xlu1 %814  ;;  %v1321_v1 = vadd.f32 %v2672_v12, %v1315_v30 }
 0x1ac   : > { %v821_v60 = vadd.f32 %v2522_v23, %v815_v58  ;;  %v2914_v34 = vadd.f32 %v1510_v17, %v1471_v5  ;;  %v882_v23 = vmul.f32 %v2564_v0, %v876_v24  ;;  %v2072_v0 = vunpack.i.l.bf16 %v2071_v35 }
 0x1ad   : > { %v1011_v17 = vmul.f32 %v2623_v28, %v1005_v43  ;;  %vm1282_vm3 = vcmp.gt.f32.partialorder %v1278_v10, 0.0  ;;  %v1329_v12 = vmul.f32 0.2, %v1321_v1  ;;  %vm1325_vm4 = vcmp.gt.f32.partialorder %v1321_v1, 0.0 }
 0x1ae   : > { %vm825_vm13 = vcmp.gt.f32.partialorder %v821_v60, 0.0  ;;  %v829_v37 = vmul.f32 0.2, %v821_v60  ;;  %v2912_v7 = vpop.permute.xlu2 %1400  ;;  %1608 = vmatpush.msrb.mxu1 %v2072_v0  ;;  %v2963_v43 = vstv %s1930_s28 }
 0x1b0   : > { %v833_v47 = vsel %vm825_vm13, %v821_v60, %v829_v37  ;;  %1520 = vmax.xlane.f32.xlu1 %v2914_v34  ;;  %1609 = vmatpush.msrb.mxu1 %v2073_v41 }
 0x1b1   : > { %v839_v25 = vmul.f32 %v2550_v53, %v833_v47  ;;  %v962_v53 = vsel %vm954_vm14, %v3148_v62, %v958_v51 }
 0x1b2   : > { %v968_v46 = vmul.f32 %v2585_v32, %v962_v53  ;;  %1610 = vmatpush.msrb.mxu1 %v2061_v33 }
 0x1b3   : > { %v843_v50 = vadd.f32 %v839_v25, %v2885_v15  ;;  %v1235_v15 = vadd.f32 %v2617_v27, %v2852_v22  ;;  %v3150_v25 = vld [vmem:[#allocation6_spill] sm:$0xff] }
 0x1b4   : > { %v901_v8 = vpop.permute.xlu1 %900  ;;  %1611 = vmatpush.msrb.mxu1 %v2062_v4  ;;  %v2943_v52 = vperm.slane %v3150_v25, 7 }
 0x1b5   : > { %v886_v56 = vadd.f32 %v882_v23, %v843_v50  ;;  %v907_v29 = vadd.f32 %v3149_v14, %v901_v8  ;;  %v1243_v60 = vmul.f32 0.2, %v1235_v15  ;;  %vm1239_vm1 = vcmp.gt.f32.partialorder %v1235_v15, 0.0 }
 0x1b6   : > { %v1407_v14 = vadd.f32 %v2686_v57, %v2912_v7 }
 0x1b7   : > { %vm911_vm15 = vcmp.gt.f32.partialorder %v907_v29, 0.0  ;;  %v915_v13 = vmul.f32 0.2, %v907_v29  ;;  %v2924_v40 = vpop.permute.xlu2 %1486  ;;  %v1247_v2 = vsel %vm1239_vm1, %v1235_v15, %v1243_v60 }
 0x1b8   : > { %v1253_v30 = vmul.f32 %v2655_v54, %v1247_v2  ;;  %v1493_v57 = vadd.f32 %v2702_v16, %v2924_v40  ;;  %vm1411_vm8 = vcmp.gt.f32.partialorder %v1407_v14, 0.0 }
 0x1b9   : > { %v919_v38 = vsel %vm911_vm15, %v907_v29, %v915_v13  ;;  %v2954_v29 = vperm.slane %v3150_v25, 6 }
 0x1ba   : > { %v925_v55 = vmul.f32 %v2581_v26, %v919_v38  ;;  %v1286_v26 = vmul.f32 0.2, %v1278_v10  ;;  %v2958_v38 = vstv %s1929_s22  ;;  %vm1497_vm9 = vcmp.gt.f32.partialorder %v1493_v57, 0.0 }
 0x1bc   : > { %v929_v5 = vadd.f32 %v925_v55, %v886_v56  ;;  %v1290_v59 = vsel %vm1282_vm3, %v1278_v10, %v1286_v26  ;;  %v1333_v56 = vsel %vm1325_vm4, %v1321_v1, %v1329_v12  ;;  %vm1661_vm3 = vcmask 130112  }
 0x1bd   : > { %v1186_v58 = vpop.permute.xlu1 %1185  ;;  %v1296_v62 = vmul.f32 %v2683_v36, %v1290_v59  ;;  %v1339_v36 = vmul.f32 %v2690_v42, %v1333_v56  ;;  %vm1678_vm4 = vcmask 130048  }
 0x1be   : > { %v1192_v27 = vadd.f32 %v2638_v9, %v1186_v58  ;;  %v972_v22 = vadd.f32 %v968_v46, %v929_v5  ;;  %v1065_v9 = vpop.permute.xlu0 %1064  ;;  %v1501_v5 = vmul.f32 0.2, %v1493_v57 }
 0x1bf   : > { %v1077_v50 = vadd.f32 %v2943_v52, %v1065_v9 }
 0x1c0   : > { %vm1196_vm2 = vcmp.gt.f32.partialorder %v1192_v27, 0.0  ;;  %v1200_v32 = vmul.f32 0.2, %v1192_v27  ;;  %v1061_v35 = vpop.permute.xlu2 %1060  ;;  %v2938_v37 = vadd.f32 %v1011_v17, %v972_v22  ;;  %v1505_v1 = vsel %vm1497_vm9, %v1493_v57, %v1501_v5 }
 0x1c1   : > { %v1085_v48 = vmul.f32 0.2, %v1077_v50  ;;  %vm1081_vm6 = vcmp.gt.f32.partialorder %v1077_v50, 0.0  ;;  %v1076_v26 = vadd.f32 %v2943_v52, %v1061_v35 }
 0x1c2   : > { %v1204_v24 = vsel %vm1196_vm2, %v1192_v27, %v1200_v32  ;;  %1518 = vmax.xlane.f32.xlu2 %v2862_v6  ;;  %vm1167_vm2 = vcmask 64512  }
 0x1c3   : > { %v1210_v47 = vmul.f32 %v3145_v49, %v1204_v24  ;;  %v1089_v10 = vsel %vm1081_vm6, %v1077_v50, %v1085_v48  ;;  %v1084_v59 = vmul.f32 0.2, %v1076_v26  ;;  %vm1080_vm12 = vcmp.gt.f32.partialorder %v1076_v26, 0.0 }
 0x1c4   : > { %v1095_v40 = vmul.f32 %v2963_v43, %v1089_v10 }
 0x1c5   : > { %v1214_v23 = vadd.f32 %v1948_v18, %v1210_v47  ;;  %v1511_v47 = vmul.f32 %v2754_v45, %v1505_v1 }
 0x1c6   : > { %v1358_v8 = vpop.permute.xlu1 %1357 }
 0x1c7   : > { %v1257_v51 = vadd.f32 %v1253_v30, %v1214_v23  ;;  %v1364_v49 = vadd.f32 %v2711_v21, %v1358_v8  ;;  %v1415_v21 = vmul.f32 0.2, %v1407_v14 }
 0x1c9   : > { %vm1368_vm5 = vcmp.gt.f32.partialorder %v1364_v49, 0.0  ;;  %v1372_v54 = vmul.f32 0.2, %v1364_v49  ;;  %v1022_v39 = vpop.permute.xlu2 %1021  ;;  %v1300_v18 = vadd.f32 %v1296_v62, %v1257_v51  ;;  %v1419_v46 = vsel %vm1411_vm8, %v1407_v14, %v1415_v21  ;;  %v3151_v14 = vld [vmem:[#allocation11_spill] sm:$0xff] }
 0x1ca   : > { %v1034_v13 = vadd.f32 %v2954_v29, %v1022_v39  ;;  %v1425_v17 = vmul.f32 %v2738_v31, %v1419_v46 }
 0x1cb   : > { %v1376_v53 = vsel %vm1368_vm5, %v1364_v49, %v1372_v54  ;;  %v1343_v15 = vadd.f32 %v1339_v36, %v1300_v18 }
 0x1cc   : > { %vm1038_vm7 = vcmp.gt.f32.partialorder %v1034_v13, 0.0  ;;  %v1042_v7 = vmul.f32 0.2, %v1034_v13  ;;  %v1382_v0 = vmul.f32 %v2734_v44, %v1376_v53 }
 0x1ce   : > { %v1046_v55 = vsel %vm1038_vm7, %v1034_v13, %v1042_v7  ;;  %v1386_v33 = vadd.f32 %v1382_v0, %v1343_v15 }
 0x1cf   : > { %v1444_v41 = vpop.permute.xlu1 %1443  ;;  %v1052_v42 = vmul.f32 %v2958_v38, %v1046_v55 }
 0x1d0   : > { %v1450_v58 = vadd.f32 %v2693_v20, %v1444_v41  ;;  %v1069_v20 = vpop.permute.xlu0 %1068  ;;  %v1429_v2 = vadd.f32 %v1425_v17, %v1386_v33 }
 0x1d1   : > { %v1056_v16 = vadd.f32 %v1052_v42, %v2811_v61  ;;  %v1078_v31 = vadd.f32 %v2943_v52, %v1069_v20 }
 0x1d2   : > { %vm1454_vm10 = vcmp.gt.f32.partialorder %v1450_v58, 0.0  ;;  %v1458_v44 = vmul.f32 0.2, %v1450_v58  ;;  %v983_v60 = vpop.permute.xlu2 %982 }
 0x1d3   : > { %v992_v27 = vadd.f32 %v3147_v63, %v983_v60  ;;  %v2971_v22 = vadd.f32 %v1095_v40, %v1056_v16  ;;  %v1086_v50 = vmul.f32 0.2, %v1078_v31  ;;  %vm1082_vm14 = vcmp.gt.f32.partialorder %v1078_v31, 0.0 }
 0x1d4   : > { %v1462_v4 = vsel %vm1454_vm10, %v1450_v58, %v1458_v44 }
 0x1d5   : > { %vm996_vm11 = vcmp.gt.f32.partialorder %v992_v27, 0.0  ;;  %v1000_v32 = vmul.f32 0.2, %v992_v27  ;;  %v1468_v61 = vmul.f32 %v2748_v11, %v1462_v4  ;;  %v1090_v39 = vsel %vm1082_vm14, %v1078_v31, %v1086_v50 }
 0x1d6   : > { %v1096_v57 = vmul.f32 %v2963_v43, %v1090_v39 }
 0x1d7   : > { %v1004_v24 = vsel %vm996_vm11, %v992_v27, %v1000_v32  ;;  %v1472_v9 = vadd.f32 %v1468_v61, %v1429_v2 }
 0x1d8   : > { %v1010_v63 = vmul.f32 %v2623_v28, %v1004_v24  ;;  %v1018_v25 = vpop.permute.xlu1 %1017  ;;  %v1088_v28 = vsel %vm1080_vm12, %v1076_v26, %v1084_v59  ;;  %v1073_v41 = vpop.permute.xlu0 %1072 }
 0x1d9   : > { %v1033_v35 = vadd.f32 %v2954_v29, %v1018_v25  ;;  %v2979_v12 = vadd.f32 %v1511_v47, %v1472_v9  ;;  %v1079_v42 = vadd.f32 %v2943_v52, %v1073_v41 }
 0x1da   : > { %v1014_v30 = vadd.f32 %v1010_v63, %v2888_v3  ;;  %v1094_v3 = vmul.f32 %v2963_v43, %v1088_v28 }
 0x1db   : > { %vm1037_vm13 = vcmp.gt.f32.partialorder %v1033_v35, 0.0  ;;  %v1041_v23 = vmul.f32 0.2, %v1033_v35  ;;  %v1026_v11 = vpop.permute.xlu2 %1025  ;;  %1522 = vmax.xlane.f32.xlu0 %v2979_v12  ;;  %v1087_v16 = vmul.f32 0.2, %v1079_v42  ;;  %vm1083_vm0 = vcmp.gt.f32.partialorder %v1079_v42, 0.0 }
 0x1dc   : > { %v1035_v45 = vadd.f32 %v2954_v29, %v1026_v11 }
 0x1dd   : > { %v1045_v8 = vsel %vm1037_vm13, %v1033_v35, %v1041_v23  ;;  %v1091_v26 = vsel %vm1083_vm0, %v1079_v42, %v1087_v16 }
 0x1de   : > { %vm1039_vm15 = vcmp.gt.f32.partialorder %v1035_v45, 0.0  ;;  %v1043_v62 = vmul.f32 0.2, %v1035_v45  ;;  %v1051_v51 = vmul.f32 %v2958_v38, %v1045_v8 }
 0x1e0   : > { %v1047_v49 = vsel %vm1039_vm15, %v1035_v45, %v1043_v62  ;;  %v2048_v56 = vpop.permute.xlu1 %2047  ;;  %v1055_v54 = vadd.f32 %v1051_v51, %v3151_v14  ;;  %v2088_v1 = vpop.permute.xlu0 %2087 }
 0x1e1   : > { %v2049_v18 = vunpack.i.l.bf16 %v2048_v56  ;;  %v1053_v48 = vmul.f32 %v2958_v38, %v1047_v49  ;;  %v2050_v53 = vunpack.i.h.bf16 %v2048_v56  ;;  %v2089_v61 = vunpack.i.l.bf16 %v2088_v1 }
 0x1e2   : > { %v2988_v13 = vadd.f32 %v1094_v3, %v1055_v54  ;;  %v2090_v24 = vunpack.i.h.bf16 %v2088_v1 }
 0x1e3   : > { %v2076_v36 = vpop.permute.xlu2 %2075  ;;  %1612 = vmatpush.msrb.mxu1 %v2049_v18  ;;  %v1057_v21 = vadd.f32 %v1053_v48, %v1014_v30 }
 0x1e4   : > { %1102 = vmax.xlane.f32.xlu1 %v2988_v13  ;;  %v2077_v44 = vunpack.i.l.bf16 %v2076_v36  ;;  %v2078_v17 = vunpack.i.h.bf16 %v2076_v36 }
 0x1e5   : > { %1613 = vmatpush.msrb.mxu1 %v2050_v53  ;;  %v2992_v7 = vadd.f32 %v1096_v57, %v1057_v21 }
 0x1e7   : > { %1106 = vmax.xlane.f32.xlu2 %v2992_v7 }
 0x1e8   : > { %v2054_v0 = vpop.permute.xlu1 %2053 }
 0x1e9   : > { %v2055_v15 = vunpack.i.l.bf16 %v2054_v0  ;;  %v2056_v10 = vunpack.i.h.bf16 %v2054_v0 }
 0x1eb   : > { %v2083_v55 = vpop.permute.xlu2 %2082  ;;  %1614 = vmatpush.msrb.mxu1 %v2055_v15 }
 0x1ec   : > { %1104 = vmax.xlane.f32.xlu1 %v2971_v22  ;;  %v2084_v4 = vunpack.i.l.bf16 %v2083_v55  ;;  %v2085_v20 = vunpack.i.h.bf16 %v2083_v55 }
 0x1ed   : > { %1615 = vmatpush.msrb.mxu1 %v2056_v10 }
 0x1f0   : > { %v2065_v46 = vpop.permute.xlu1 %2064 }
 0x1f1   : > { %v2066_v5 = vunpack.i.l.bf16 %v2065_v46  ;;  %v2067_v58 = vunpack.i.h.bf16 %v2065_v46 }
 0x1f3   : > { %v1030_v33 = vpop.permute.xlu2 %1029  ;;  %1616 = vmatpush.msrb.mxu1 %v2066_v5 }
 0x1f4   : > { %v1036_v40 = vadd.f32 %v2954_v29, %v1030_v33  ;;  %v1097_v29 = vmul.f32 %v2963_v43, %v1091_v26 }
 0x1f5   : > { %1617 = vmatpush.msrb.mxu1 %v2067_v58 }
 0x1f6   : > { %vm1040_vm1 = vcmp.gt.f32.partialorder %v1036_v40, 0.0  ;;  %v1044_v60 = vmul.f32 0.2, %v1036_v40 }
 0x1f7   : > { %1618 = vmatpush.msrb.mxu1 %v2077_v44 }
 0x1f8   : > { %v1048_v27 = vsel %vm1040_vm1, %v1036_v40, %v1044_v60 }
 0x1f9   : > { %1619 = vmatpush.msrb.mxu1 %v2078_v17  ;;  %v1054_v52 = vmul.f32 %v2958_v38, %v1048_v27 }
 0x1fb   : > { %1620 = vmatpush.msrb.mxu1 %v2084_v4  ;;  %v1058_v32 = vadd.f32 %v1054_v52, %v2938_v37 }
 0x1fd   : > { %1621 = vmatpush.msrb.mxu1 %v2085_v20  ;;  %v1101_v2 = vadd.f32 %v1097_v29, %v1058_v32 }
 0x1ff   : > { %1108 = vmax.xlane.f32.xlu1 %v1101_v2  ;;  %1622 = vmatpush.msrb.mxu1 %v2089_v61 }
 0x201   : > { %1623 = vmatpush.msrb.mxu1 %v2090_v24 }
 0x21b   : > { %v1517_v9 = vpop.xlane.xlu1 %1516 }
 0x21c   : > { %v1524_v47 = vsub.f32 %v2766_v19, %v1517_v9 }
 0x21e   : > { %v1528_v31 = vmul.f32 1.442695, %v1524_v47  ;;  %v2094_v47 = vld [vmem:[%s3093_s10] ss:$0 sm:$0xff] }
 0x220   : > { %2097 = vpow2.f32 %v1528_v31 }
 0x223   : > { %v1521_v25 = vpop.xlane.xlu1 %1520 }
 0x224   : > { %v1526_v59 = vsub.f32 %v2914_v34, %v1521_v25 }
 0x226   : > { %v2098_v38 = vpop.eup %2097  ;;  %v1532_v35 = vmul.f32 1.442695, %v1526_v59 }
 0x227   : > { %1536 = vadd.xlane.f32.xlu2 %v2098_v38  ;;  %1624 = vmatmul.f32.vlgmr.msrb.gmra.mxu1 %v2098_v38 }
 0x235   : > { %v1519_v63 = vpop.xlane.xlu2 %1518 }
 0x236   : > { %v1525_v37 = vsub.f32 %v2862_v6, %v1519_v63 }
 0x238   : > { %v1530_v43 = vmul.f32 1.442695, %v1525_v37 }
 0x23a   : > { %2099 = vpow2.f32 %v1530_v43 }
 0x23b   : > { %2101 = vpow2.f32 %v1532_v35 }
 0x240   : > { %v2100_v30 = vpop.eup %2099 }
 0x241   : > { %1538 = vadd.xlane.f32.xlu1 %v2100_v30  ;;  %1627 = vmatmul.f32.gmra.mxu1 %v2100_v30  ;;  %v2102_v23 = vpop.eup %2101 }
 0x249   : > { %1630 = vmatmul.f32.gmra.mxu1 %v2102_v23 }
 0x24e   : > { %v1523_v19 = vpop.xlane.xlu0 %1522 }
 0x24f   : > { %v1527_v11 = vsub.f32 %v2979_v12, %v1523_v19 }
 0x251   : > { %v1534_v50 = vmul.f32 1.442695, %v1527_v11 }
 0x253   : > { %2103 = vpow2.f32 %v1534_v50 }
 0x257   : > { %v1103_v45 = vpop.xlane.xlu1 %1102 }
 0x258   : > { %v1110_v6 = vsub.f32 %v2988_v13, %v1103_v45 }
 0x259   : > { %v2104_v8 = vpop.eup %2103 }
 0x25a   : > { %v1114_v28 = vmul.f32 1.442695, %v1110_v6  ;;  %v1107_v62 = vpop.xlane.xlu2 %1106  ;;  %1542 = vadd.xlane.f32.xlu1 %v2104_v8  ;;  %1633 = vmatmul.f32.gmra.mxu1 %v2104_v8  ;;  %v2185_v8 = vmov 16.0  }
 0x25b   : > { %v1112_v34 = vsub.f32 %v2992_v7, %v1107_v62 }
 0x25c   : > { %2105 = vpow2.f32 %v1114_v28 }
 0x25d   : > { %v1118_v51 = vmul.f32 1.442695, %v1112_v34 }
 0x25f   : > { %2107 = vpow2.f32 %v1118_v51  ;;  %v1105_v49 = vpop.xlane.xlu1 %1104 }
 0x260   : > { %v1111_v56 = vsub.f32 %v2971_v22, %v1105_v49 }
 0x262   : > { %v2106_v14 = vpop.eup %2105  ;;  %v1116_v12 = vmul.f32 1.442695, %v1111_v56 }
 0x263   : > { %1122 = vadd.xlane.f32.xlu2 %v2106_v14  ;;  %1146 = vmatmul.f32.vlgmr.msrb.gmra.mxu3 %v2106_v14 }
 0x264   : > { %2109 = vpow2.f32 %v1116_v12 }
 0x265   : > { %v2108_v54 = vpop.eup %2107 }
 0x266   : > { %1126 = vadd.xlane.f32.xlu1 %v2108_v54 }
 0x26a   : > { %v2110_v3 = vpop.eup %2109 }
 0x26b   : > { %1540 = vadd.xlane.f32.xlu2 %v2102_v23  ;;  %1124 = vadd.xlane.f32.xlu0 %v2110_v3 }
 0x26c   : > { %1149 = vmatmul.f32.gmra.mxu3 %v2110_v3 }
 0x272   : > { %v1109_v39 = vpop.xlane.xlu1 %1108 }
 0x273   : > { %v1113_v18 = vsub.f32 %v1101_v2, %v1109_v39 }
 0x274   : > { %1152 = vmatmul.f32.gmra.mxu3 %v2108_v54 }
 0x275   : > { %v1120_v48 = vmul.f32 1.442695, %v1113_v18 }
 0x277   : > { %2111 = vpow2.f32 %v1120_v48 }
 0x27d   : > { %v2112_v13 = vpop.eup %2111 }
 0x27e   : > { %1128 = vadd.xlane.f32.xlu2 %v2112_v13  ;;  %1155 = vmatmul.f32.gmra.mxu3 %v2112_v13 }
 0x29a   : > { %v1537_v22 = vpop.xlane.xlu2 %1536 }
 0x29b   : > { %2113 = vrcp.f32 %v1537_v22 }
 0x2a1   : > { %v2114_v36 = vpop.eup %2113 }
 0x2a4   : > { %v1625_v53 = vpop.f32.mrf.mxu1 }
 0x2a5   : > { %v1641_v21 = vmul.f32 %v2114_v36, %v1625_v53 }
 0x2a7   : > { %1649 = vrot.lane.b32.xlu0 %v1641_v21, %s2184_s16 }
 0x2b4   : > { %v1539_v57 = vpop.xlane.xlu1 %1538 }
 0x2b5   : > { %2115 = vrcp.f32 %v1539_v57 }
 0x2bb   : > { %v2116_v7 = vpop.eup %2115 }
 0x2be   : > { %v1628_v0 = vpop.f32.mrf.mxu1 }
 0x2bf   : > { %v1642_v15 = vmul.f32 %v2116_v7, %v1628_v0 }
 0x2c1   : > { %1651 = vrot.lane.b32.xlu1 %v1642_v15, %s2184_s16 }
 0x2c6   : > { %v1631_v10 = vpop.f32.mrf.mxu1 }
 0x2cd   : > { %v1543_v55 = vpop.xlane.xlu1 %1542 }
 0x2ce   : > { %2117 = vrcp.f32 %v1543_v55 }
 0x2d4   : > { %v2118_v42 = vpop.eup %2117 }
 0x2d6   : > { %v1123_v41 = vpop.xlane.xlu2 %1122 }
 0x2d7   : > { %v1634_v46 = vpop.f32.mrf.mxu1 }
 0x2d8   : > { %v1644_v5 = vmul.f32 %v2118_v42, %v1634_v46 }
 0x2d9   : > { %v1127_v27 = vpop.xlane.xlu1 %1126 }
 0x2da   : > { %1655 = vrot.lane.b32.xlu0 %v1644_v5, %s2184_s16 }
 0x2de   : > { %v1541_v58 = vpop.xlane.xlu2 %1540  ;;  %v1125_v40 = vpop.xlane.xlu0 %1124 }
 0x2df   : > { %2119 = vrcp.f32 %v1541_v58 }
 0x2e0   : > { %2121 = vrcp.f32 %v1123_v41 }
 0x2e1   : > { %2123 = vrcp.f32 %v1125_v40 }
 0x2e2   : > { %2125 = vrcp.f32 %v1127_v27  ;;  %v3045_v27 = vld [vmem:[%s3095_s12] ss:$0 sm:$0xff] }
 0x2e5   : > { %v2120_v33 = vpop.eup %2119 }
 0x2e6   : > { %v2122_v16 = vpop.eup %2121  ;;  %v1147_v44 = vpop.f32.mrf.mxu3  ;;  %v1643_v60 = vmul.f32 %v2120_v33, %v1631_v10 }
 0x2e7   : > { %v1163_v17 = vmul.f32 %v2122_v16, %v1147_v44  ;;  %v2124_v26 = vpop.eup %2123 }
 0x2e8   : > { %1653 = vrot.lane.b32.xlu2 %v1643_v60, %s2184_s16  ;;  %v2126_v1 = vpop.eup %2125 }
 0x2e9   : > { %1168 = vst.msk [vmem:[#allocation2] sm:$0xff] %vm1167_vm2, %v1163_v17 }
 0x2ef   : > { %v1150_v4 = vpop.f32.mrf.mxu3 }
 0x2f0   : > { %v1164_v52 = vmul.f32 %v2124_v26, %v1150_v4  ;;  %v3050_v4 = vld [vmem:[%s3096_s13] ss:$0 sm:$0xff] }
 0x2f1   : > { %v1129_v32 = vpop.xlane.xlu2 %1128 }
 0x2f2   : > { %1169 = vst.msk [vmem:[#allocation2 + $0x8] sm:$0xff] %vm1167_vm2, %v1164_v52  ;;  %2127 = vrcp.f32 %v1129_v32 }
 0x2f3   : > { %2129 = vrcp.f32 %v2185_v8 }
 0x2f7   : > { %v1153_v20 = vpop.f32.mrf.mxu3 }
 0x2f8   : > { %v1165_v29 = vmul.f32 %v2126_v1, %v1153_v20  ;;  %v2128_v2 = vpop.eup %2127 }
 0x2f9   : > { %v2130_v28 = vpop.eup %2129 }
 0x2fa   : > { %1170 = vst.msk [vmem:[#allocation2 + $0x10] sm:$0xff] %vm1167_vm2, %v1165_v29  ;;  %v1692_v62 = vmul.f32 16.0, %v2130_v28  ;;  %vm1696_vm5 = vweird.f32 %v2130_v28 }
 0x2fc   : > { %v1693_v34 = vsub.f32 1.0, %v1692_v62 }
 0x2fe   : > { %v1694_v51 = vmul.f32 %v2130_v28, %v1693_v34 }
 0x300   : > { %v1695_v49 = vadd.f32 %v2130_v28, %v1694_v51 }
 0x301   : > { %v1156_v61 = vpop.f32.mrf.mxu3 }
 0x302   : > { %v1166_v24 = vmul.f32 %v2128_v2, %v1156_v61  ;;  %v3023_v56 = vsel %vm1696_vm5, %v2130_v28, %v1695_v49 }
 0x304   : > { %1171 = vst.msk [vmem:[#allocation2 + $0x18] sm:$0xff] %vm1167_vm2, %v1166_v24 }
 0x319   : > { %v1650_v9 = vpop.permute.xlu0 %1649 }
 0x31a   : > { %1662 = vst.msk [vmem:[#allocation2] sm:$0xff] %vm1661_vm3, %v1650_v9 }
 0x321   : > { %v1666_v31 = vld [vmem:[#allocation2] sm:$0xff] }
 0x322   : > { %v1674_v38 = vadd.f32 %v2094_v47, %v1666_v31 }
 0x324   : > { %v1679_v63 = vsel %vm1678_vm4, %v1674_v38, 0.0 }
 0x325   : > { %1680 = vadd.xlane.f32.xlu1 %v1679_v63 }
 0x333   : > { %v1652_v37 = vpop.permute.xlu1 %1651 }
 0x334   : > { %1663 = vst.msk [vmem:[#allocation2 + $0x8] sm:$0xff] %vm1661_vm3, %v1652_v37 }
 0x33b   : > { %v1667_v25 = vld [vmem:[#allocation2 + $0x8] sm:$0xff] }
 0x33c   : > { %v1675_v43 = vadd.f32 %v2094_v47, %v1667_v25 }
 0x33e   : > { %v1682_v59 = vsel %vm1678_vm4, %v1675_v43, 0.0 }
 0x33f   : > { %1683 = vadd.xlane.f32.xlu0 %v1682_v59 }
 0x342   : > { %v1654_v35 = vpop.permute.xlu2 %1653 }
 0x343   : > { %1664 = vst.msk [vmem:[#allocation2 + $0x10] sm:$0xff] %vm1661_vm3, %v1654_v35 }
 0x34a   : > { %v1668_v30 = vld [vmem:[#allocation2 + $0x10] sm:$0xff] }
 0x34b   : > { %v1676_v23 = vadd.f32 %v2094_v47, %v1668_v30 }
 0x34c   : > { %v1656_v19 = vpop.permute.xlu0 %1655 }
 0x34d   : > { %1665 = vst.msk [vmem:[#allocation2 + $0x18] sm:$0xff] %vm1661_vm3, %v1656_v19  ;;  %v1685_v11 = vsel %vm1678_vm4, %v1676_v23, 0.0 }
 0x34e   : > { %1686 = vadd.xlane.f32.xlu2 %v1685_v11 }
 0x354   : > { %v1669_v50 = vld [vmem:[#allocation2 + $0x18] sm:$0xff] }
 0x355   : > { %v1677_v45 = vadd.f32 %v2094_v47, %v1669_v50 }
 0x357   : > { %v1688_v6 = vsel %vm1678_vm4, %v1677_v45, 0.0 }
 0x358   : > { %1689 = vadd.xlane.f32.xlu1 %v1688_v6 }
 0x398   : > { %v1681_v14 = vpop.xlane.xlu1 %1680 }
 0x399   : > { %v1698_v12 = vmul.f32 %v3023_v56, %v1681_v14 }
 0x39b   : > { %v1702_v54 = vsub.f32 %v1674_v38, %v1698_v12 }
 0x39d   : > { %v1706_v3 = vmul.f32 %v1702_v54, %v1702_v54 }
 0x39f   : > { %v1710_v39 = vsel %vm1678_vm4, %v1706_v3, 0.0 }
 0x3a0   : > { %1711 = vadd.xlane.f32.xlu0 %v1710_v39 }
 0x3b2   : > { %v1684_v18 = vpop.xlane.xlu0 %1683 }
 0x3b3   : > { %v1699_v48 = vmul.f32 %v3023_v56, %v1684_v18 }
 0x3b5   : > { %v1703_v13 = vsub.f32 %v1675_v43, %v1699_v48 }
 0x3b7   : > { %v1707_v22 = vmul.f32 %v1703_v13, %v1703_v13 }
 0x3b9   : > { %v1713_v36 = vsel %vm1678_vm4, %v1707_v22, 0.0 }
 0x3ba   : > { %1714 = vadd.xlane.f32.xlu2 %v1713_v36 }
 0x3c1   : > { %v1687_v53 = vpop.xlane.xlu2 %1686 }
 0x3c2   : > { %v1700_v21 = vmul.f32 %v3023_v56, %v1687_v53 }
 0x3c4   : > { %v3030_v57 = vsub.f32 %v1676_v23, %v1700_v21 }
 0x3c6   : > { %v1708_v7 = vmul.f32 %v3030_v57, %v3030_v57 }
 0x3c8   : > { %v1716_v0 = vsel %vm1678_vm4, %v1708_v7, 0.0 }
 0x3c9   : > { %1717 = vadd.xlane.f32.xlu1 %v1716_v0 }
 0x3cb   : > { %v1690_v15 = vpop.xlane.xlu1 %1689 }
 0x3cc   : > { %v1701_v55 = vmul.f32 %v3023_v56, %v1690_v15 }
 0x3ce   : > { %v3036_v10 = vsub.f32 %v1677_v45, %v1701_v55 }
 0x3d0   : > { %v1709_v41 = vmul.f32 %v3036_v10, %v3036_v10 }
 0x3d2   : > { %v1719_v42 = vsel %vm1678_vm4, %v1709_v41, 0.0 }
 0x3d3   : > { %1720 = vadd.xlane.f32.xlu0 %v1719_v42 }
 0x413   : > { %v1712_v46 = vpop.xlane.xlu0 %1711 }
 0x414   : > { %v1722_v5 = vmul.f32 %v1712_v46, %v3023_v56 }
 0x416   : > { %v1726_v58 = vadd.f32 1e-05, %v1722_v5 }
 0x418   : > { %2131 = vrsqrt.f32 %v1726_v58  ;;  %vm1736_vm7 = vweird.f32 %v1726_v58 }
 0x41e   : > { %v2132_v33 = vpop.eup %2131 }
 0x41f   : > { %v1731_v16 = vmul.f32 %v2132_v33, %v1726_v58  ;;  %vm1737_vm6 = vweird.f32 %v2132_v33 }
 0x420   : > { %vm1738_vm8 = vmor %vm1736_vm7, %vm1737_vm6 }
 0x421   : > { %v1732_v40 = vmul.f32 %v2132_v33, %v1731_v16 }
 0x423   : > { %v1733_v44 = vmul.f32 0.5, %v1732_v40 }
 0x425   : > { %v1734_v60 = vsub.f32 1.5, %v1733_v44 }
 0x427   : > { %v1735_v17 = vmul.f32 %v2132_v33, %v1734_v60 }
 0x429   : > { %v1739_v26 = vsel %vm1738_vm8, %v2132_v33, %v1735_v17 }
 0x42a   : > { %v1770_v52 = vmul.f32 %v1739_v26, %v1702_v54 }
 0x42c   : > { %v1778_v1 = vmul.f32 %v3045_v27, %v1770_v52 }
 0x42d   : > { %v1715_v20 = vpop.xlane.xlu2 %1714 }
 0x42e   : > { %v1786_v32 = vadd.f32 %v3050_v4, %v1778_v1  ;;  %v1723_v29 = vmul.f32 %v1715_v20, %v3023_v56 }
 0x430   : > { %vm1790_vm9 = vcmp.gt.f32.partialorder %v1786_v32, 0.0  ;;  %v1794_v2 = vmul.f32 0.01, %v1786_v32  ;;  %v1727_v61 = vadd.f32 1e-05, %v1723_v29 }
 0x432   : > { %v1798_v24 = vsel %vm1790_vm9, %v1786_v32, %v1794_v2  ;;  %2133 = vrsqrt.f32 %v1727_v61  ;;  %vm1746_vm11 = vweird.f32 %v1727_v61 }
 0x433   : > { %1802 = vst.msk [vmem:[%s3060_s27] sm:$0xff] %vm1678_vm4, %v1798_v24 }
 0x438   : > { %v2134_v9 = vpop.eup %2133 }
 0x439   : > { %v1741_v47 = vmul.f32 %v2134_v9, %v1727_v61  ;;  %vm1747_vm10 = vweird.f32 %v2134_v9 }
 0x43a   : > { %vm1748_vm12 = vmor %vm1746_vm11, %vm1747_vm10 }
 0x43b   : > { %v1742_v31 = vmul.f32 %v2134_v9, %v1741_v47 }
 0x43c   : > { %v1718_v38 = vpop.xlane.xlu1 %1717 }
 0x43d   : > { %v1743_v63 = vmul.f32 0.5, %v1742_v31  ;;  %v1724_v37 = vmul.f32 %v1718_v38, %v3023_v56 }
 0x43f   : > { %v1744_v25 = vsub.f32 1.5, %v1743_v63  ;;  %v1728_v43 = vadd.f32 1e-05, %v1724_v37 }
 0x441   : > { %v1745_v59 = vmul.f32 %v2134_v9, %v1744_v25  ;;  %2135 = vrsqrt.f32 %v1728_v43  ;;  %vm1756_vm15 = vweird.f32 %v1728_v43 }
 0x443   : > { %v1749_v35 = vsel %vm1748_vm12, %v2134_v9, %v1745_v59 }
 0x444   : > { %v1771_v30 = vmul.f32 %v1749_v35, %v1703_v13 }
 0x446   : > { %v1779_v23 = vmul.f32 %v3045_v27, %v1771_v30  ;;  %v1721_v19 = vpop.xlane.xlu0 %1720 }
 0x447   : > { %v2136_v11 = vpop.eup %2135  ;;  %v1725_v50 = vmul.f32 %v1721_v19, %v3023_v56 }
 0x448   : > { %v1787_v45 = vadd.f32 %v3050_v4, %v1779_v23  ;;  %v1751_v6 = vmul.f32 %v2136_v11, %v1728_v43  ;;  %vm1757_vm14 = vweird.f32 %v2136_v11 }
 0x449   : > { %v1729_v8 = vadd.f32 1e-05, %v1725_v50  ;;  %vm1758_vm0 = vmor %vm1756_vm15, %vm1757_vm14 }
 0x44a   : > { %vm1791_vm13 = vcmp.gt.f32.partialorder %v1787_v45, 0.0  ;;  %v1795_v28 = vmul.f32 0.01, %v1787_v45  ;;  %v1752_v62 = vmul.f32 %v2136_v11, %v1751_v6 }
 0x44b   : > { %2137 = vrsqrt.f32 %v1729_v8  ;;  %vm1766_vm3 = vweird.f32 %v1729_v8 }
 0x44c   : > { %v1799_v34 = vsel %vm1791_vm13, %v1787_v45, %v1795_v28  ;;  %v1753_v51 = vmul.f32 0.5, %v1752_v62 }
 0x44d   : > { %1803 = vst.msk [vmem:[%s3060_s27 + $0x8] sm:$0xff] %vm1678_vm4, %v1799_v34 }
 0x44e   : > { %v1754_v49 = vsub.f32 1.5, %v1753_v51 }
 0x450   : > { %v1755_v14 = vmul.f32 %v2136_v11, %v1754_v49 }
 0x451   : > { %v2138_v12 = vpop.eup %2137 }
 0x452   : > { %v1759_v56 = vsel %vm1758_vm0, %v2136_v11, %v1755_v14  ;;  %v1761_v54 = vmul.f32 %v2138_v12, %v1729_v8  ;;  %vm1767_vm1 = vweird.f32 %v2138_v12 }
 0x453   : > { %v1772_v3 = vmul.f32 %v1759_v56, %v3030_v57  ;;  %vm1768_vm5 = vmor %vm1766_vm3, %vm1767_vm1 }
 0x454   : > { %v1762_v39 = vmul.f32 %v2138_v12, %v1761_v54 }
 0x455   : > { %v1780_v18 = vmul.f32 %v3045_v27, %v1772_v3 }
 0x456   : > { %v1763_v48 = vmul.f32 0.5, %v1762_v39 }
 0x457   : > { %v1788_v13 = vadd.f32 %v3050_v4, %v1780_v18 }
 0x458   : > { %v1764_v22 = vsub.f32 1.5, %v1763_v48 }
 0x459   : > { %vm1792_vm2 = vcmp.gt.f32.partialorder %v1788_v13, 0.0  ;;  %v1796_v36 = vmul.f32 0.01, %v1788_v13 }
 0x45a   : > { %v1765_v53 = vmul.f32 %v2138_v12, %v1764_v22 }
 0x45b   : > { %v1800_v21 = vsel %vm1792_vm2, %v1788_v13, %v1796_v36 }
 0x45c   : > { %1804 = vst.msk [vmem:[%s3060_s27 + $0x10] sm:$0xff] %vm1678_vm4, %v1800_v21  ;;  %v1769_v7 = vsel %vm1768_vm5, %v2138_v12, %v1765_v53 }
 0x45d   : > { %v1773_v57 = vmul.f32 %v1769_v7, %v3036_v10 }
 0x45f   : > { %v1781_v0 = vmul.f32 %v3045_v27, %v1773_v57 }
 0x461   : > { %v1789_v15 = vadd.f32 %v3050_v4, %v1781_v0 }
 0x463   : > { %vm1793_vm6 = vcmp.gt.f32.partialorder %v1789_v15, 0.0  ;;  %v1797_v55 = vmul.f32 0.01, %v1789_v15 }
 0x465   : > { %v1801_v41 = vsel %vm1793_vm6, %v1789_v15, %v1797_v55 }
 0x466   : > { %1805 = vst.msk [vmem:[%s3060_s27 + $0x18] sm:$0xff] %vm1678_vm4, %v1801_v41 }
 0x467 PF: > { %s25_s29 = sadd.s32 1, %s2164_s29  }
 0x468   : > { %p22_p7 = scmp.ge.s32.totalorder %s25_s29, 6  }
 0x46a   :  { %24 = sbr.rel (!%p22_p7) target bundleno = 1 (0x1), region = 114 }
 0x46f   :  { %1828 = vsyncpa [#allocation4], 1 }
 0x470   :  { %1830 = vsyncpa [#allocation4 + $0x1], 1 }

</bundles_post_ra>
